<compile_context>
chip_gen: v7x
topology: tpu7x:2x2x1
jax: 0.10.0
libtpu: 0.0.40
codegen_flags: <defaults>
</compile_context>

<pallas_src>
import math
from functools import partial

import jax
import jax.numpy as jnp
from jax.experimental import pallas as pl
from jax.experimental.pallas import tpu as pltpu


def _round_up(x, m):
    return ((x + m - 1) // m) * m


def _qconv_fused_kernel(x_ref, w_ref, sb_ref, o_ref, *, stride, tile_oh, ow):
    # x_ref  : (Hp, Wp, C)        bf16 integer-valued quantized activations (full image)
    # w_ref  : (KH, KW, C, toc)   bf16 raw int8 weight values (exact in bf16)
    # sb_ref : (2, toc)           f32  row 0 = act_scale * w_scale, row 1 = bias
    # o_ref  : (tile_oh*ow, toc)  f32
    KH, KW, C, toc = w_ref.shape
    r = pl.program_id(2)                        # output-row tile index within the image
    h0 = r * (tile_oh * stride)                 # first input row of this tile

    acc = jnp.zeros((tile_oh * ow, toc), jnp.float32)
    for kh in range(KH):                        # static loops: KH*KW small MXU matmuls,
        if stride == 1:                         # all operand slicing happens in VMEM.
            rows = x_ref[pl.ds(h0 + kh, tile_oh), :, :]          # (tile_oh, Wp, C)
        else:
            rows = x_ref[pl.ds(h0 + kh, tile_oh, stride), :, :]
        for kw in range(KW):
            if stride == 1:
                xs = rows[:, kw:kw + ow, :]                       # (tile_oh, ow, C)
            else:
                xs = jax.lax.slice(rows, (0, kw, 0),
                                   (tile_oh, kw + (ow - 1) * stride + 1, C),
                                   (1, stride, 1))
            acc = acc + jnp.dot(xs.reshape(tile_oh * ow, C), w_ref[kh, kw],
                                preferred_element_type=jnp.float32)
    o_ref[...] = acc * sb_ref[0:1, :] + sb_ref[1:2, :]


def quantized_conv2d(x, int8_weights, scales, bias, *, stride=1, padding=0):
    """Forward of QuantizedConv2d.  x: (N, C, H, W) f32 -> (N, OC, OH, OW) f32."""
    N, C, H, W = x.shape
    OC, _, KH, KW = int8_weights.shape
    x = x.astype(jnp.float32)

    # ---- per-tensor activation quantization, done once, before any replication
    act_scale = jnp.max(jnp.abs(x)) / 127.0
    # guard against all-zero input (the PyTorch reference divides by zero there)
    safe_scale = jnp.maximum(act_scale, jnp.finfo(jnp.float32).tiny)
    # integer values in [-127, 127] -> exact in bf16, half the HBM bytes of f32.
    # TODO(synk): on v5e/v6e the MXU has a native int8 path (i8 x i8 -> i32) that
    # would halve these bytes again; kept bf16 here because v7x has no int MXU.
    x_q = jnp.round(x / safe_scale).astype(jnp.bfloat16)

    # ---- output geometry
    OH = (H + 2 * padding - KH) // stride + 1
    OW = (W + 2 * padding - KW) // stride + 1
    OC_pad = _round_up(OC, 128)                     # lane-dense output stores

    # OC tile: keep weight / output blocks modest when OC is large.
    if OC_pad <= 512:
        tile_oc = OC_pad
    elif OC_pad % 512 == 0:
        tile_oc = 512
    elif OC_pad % 256 == 0:
        tile_oc = 256
    else:
        tile_oc = 128
    n_oc = OC_pad // tile_oc

    # Row tile: ~512 matmul rows per step, but keep >=4 row tiles per image when
    # possible so the per-step DMAs pipeline (and v7x's 2 TCs both get work);
    # tile_oh*OW kept a multiple of 8 so the f32 output block is sublane-dense.
    align = 8 // math.gcd(OW, 8)
    tile_oh = max(1, min(max(1, 512 // OW), pl.cdiv(OH, 4)))
    tile_oh = _round_up(tile_oh, align)

    Wp = W + 2 * padding

    def vmem_bytes(t_oh):
        oh_pad = _round_up(OH, t_oh)
        hp = max(H + 2 * padding, (oh_pad - 1) * stride + KH)
        x_blk = hp * Wp * C * 2                     # bf16, double-buffered
        w_blk = KH * KW * C * tile_oc * 2           # bf16, ~single-buffered
        o_blk = t_oh * OW * tile_oc * 4             # f32,  double-buffered
        sb_blk = 2 * tile_oc * 4
        return 2 * x_blk + w_blk + sb_blk + 2 * o_blk

    VMEM_BUDGET = 40 * 1024 * 1024                  # fits v7x (64 MiB) with headroom
    while tile_oh > align and vmem_bytes(tile_oh) > VMEM_BUDGET:
        tile_oh = _round_up(max(align, tile_oh // 2), align)
    # TODO(synk): for very large images the full (Hp, Wp, C) slab may not fit in
    # VMEM; that case needs halo-windowed H blocking (pl.Element / manual DMA).

    OH_pad = _round_up(OH, tile_oh)
    n_rows = OH_pad // tile_oh
    Hp = max(H + 2 * padding, (OH_pad - 1) * stride + KH)

    # ---- NHWC + zero padding (conv padding + extra bottom rows for row tiling)
    x_nhwc = jnp.pad(
        x_q.transpose(0, 2, 3, 1),
        ((0, 0), (padding, Hp - H - padding), (padding, padding), (0, 0)))

    # ---- weights: raw int8 values as bf16, laid out (KH, KW, C, OC_pad)
    w = int8_weights.astype(jnp.bfloat16).transpose(2, 3, 1, 0)
    w = jnp.pad(w, ((0, 0), (0, 0), (0, 0), (0, OC_pad - OC)))

    # ---- merged epilogue operand: row 0 = act_scale * w_scale, row 1 = bias
    fused_scale = (safe_scale * scales.astype(jnp.float32)).reshape(1, OC)
    bias_v = (jnp.zeros((1, OC), jnp.float32) if bias is None
              else bias.reshape(1, OC).astype(jnp.float32))
    sb = jnp.pad(jnp.concatenate([fused_scale, bias_v], axis=0),
                 ((0, 0), (0, OC_pad - OC)))

    kernel = partial(_qconv_fused_kernel, stride=stride, tile_oh=tile_oh, ow=OW)
    grid = (N, n_oc, n_rows)

    def build_call(single_buffer_invariant):
        def spec(shape, imap, invariant=False):
            if invariant and single_buffer_invariant:
                return pl.BlockSpec(shape, imap, pipeline_mode=pl.Buffered(1))
            return pl.BlockSpec(shape, imap)

        return pl.pallas_call(
            kernel,
            out_shape=jax.ShapeDtypeStruct((N, OH_pad * OW, OC_pad), jnp.float32),
            grid_spec=pltpu.PrefetchScalarGridSpec(
                num_scalar_prefetch=0,
                grid=grid,
                in_specs=[
                    # full padded image; re-fetched only when the sample changes
                    spec((None, Hp, Wp, C), lambda n, j, r: (n, 0, 0, 0)),
                    # weights / fused scale+bias: invariant when there is one OC tile
                    spec((KH, KW, C, tile_oc), lambda n, j, r: (0, 0, 0, j),
                         invariant=(n_oc == 1)),
                    spec((2, tile_oc), lambda n, j, r: (0, j),
                         invariant=(n_oc == 1)),
                ],
                out_specs=spec((None, tile_oh * OW, tile_oc),
                               lambda n, j, r: (n, r, j)),
            ),
            compiler_params=pltpu.CompilerParams(
                dimension_semantics=("parallel", "parallel", "parallel"),
                vmem_limit_bytes=48 * 1024 * 1024),
        )

    try:
        out = build_call(True)(x_nhwc, w, sb)
    except Exception:
        # JAX versions without BlockSpec(pipeline_mode=...) support: drop the
        # single-buffering hint and retry (results are identical).
        out = build_call(False)(x_nhwc, w, sb)

    out = out.reshape(N, OH_pad, OW, OC_pad)[:, :OH, :, :OC]
    return out.transpose(0, 3, 1, 2)                # module semantics: NCHW output


def _reference_forward(x, int8_weights, scales, bias, stride, padding):
    """Pure-JAX mirror of the PyTorch forward, for validation."""
    x = x.astype(jnp.float32)
    act_scale = jnp.max(jnp.abs(x)) / 127.0
    x_dq = jnp.round(x / act_scale) * act_scale
    w_dq = int8_weights.astype(jnp.float32) * scales.reshape(-1, 1, 1, 1)
    out = jax.lax.conv_general_dilated(
        x_dq, w_dq, window_strides=(stride, stride),
        padding=[(padding, padding), (padding, padding)],
        dimension_numbers=("NCHW", "OIHW", "NCHW"),
        precision=jax.lax.Precision.HIGHEST)
    if bias is not None:
        out = out + bias.reshape(1, -1, 1, 1)
    return out


if __name__ == "__main__":
    # module config: in_channels=4, out_channels=8, kernel_size=3, stride=1, padding=1
    N, C, H, W = 2, 4, 16, 16
    OC, K = 8, 3
    stride, padding = 1, 1

    key = jax.random.PRNGKey(0)
    k_w, k_s, k_b, k_x = jax.random.split(key, 4)

    # deterministic "buffers" (match shapes/dtypes of the torch module __init__)
    int8_weights = jax.random.randint(k_w, (OC, C, K, K), -128, 127,
                                      dtype=jnp.int32).astype(jnp.int8)
    scales = jax.random.normal(k_s, (OC,), jnp.float32)
    bias = jax.random.normal(k_b, (OC,), jnp.float32)

    x = jax.random.normal(k_x, (N, C, H, W), jnp.float32)

    out = quantized_conv2d(x, int8_weights, scales, bias,
                           stride=stride, padding=padding)
    out = jax.block_until_ready(out)

    ref = _reference_forward(x, int8_weights, scales, bias, stride, padding)
    assert out.shape == ref.shape == (N, OC, H, W), (out.shape, ref.shape)
    assert jnp.allclose(out, ref, rtol=1e-3, atol=1e-3), float(
        jnp.max(jnp.abs(out - ref)))

    print("KERNEL_OK")
</pallas_src>

<mosaic_0001>
module attributes {stable_mosaic.version = 11 : i64} {
  func.func @_qconv_fused_kernel(%arg0: i32, %arg1: i32, %arg2: i32, %arg3: memref<1x18x18x4xbf16, #tpu.memory_space<vmem>>, %arg4: memref<3x3x4x128xbf16, #tpu.memory_space<vmem>>, %arg5: memref<2x128xf32, #tpu.memory_space<vmem>>, %arg6: memref<1x64x128xf32, #tpu.memory_space<vmem>>) attributes {dimension_semantics = [#tpu.dimension_semantics<parallel>, #tpu.dimension_semantics<parallel>, #tpu.dimension_semantics<parallel>], iteration_bounds = array<i64: 2, 1, 4>, scalar_prefetch = 0 : i64, scratch_operands = 0 : i64, tpu.core_type = #tpu.core_type<tc>, window_params = [{transform_indices = @transform_0, window_bounds = array<i64: 1, 18, 18, 4>}, {pipeline_mode = #tpu.pipeline_mode<synchronous>, transform_indices = @transform_1, window_bounds = array<i64: 3, 3, 4, 128>}, {pipeline_mode = #tpu.pipeline_mode<synchronous>, transform_indices = @transform_2, window_bounds = array<i64: 2, 128>}, {transform_indices = @transform_3, window_bounds = array<i64: 1, 64, 128>}]} {
    %c4_i32 = arith.constant 4 : i32
    %0 = arith.muli %arg2, %c4_i32 : i32
    %cst = arith.constant 0.000000e+00 : f32
    %1 = vector.broadcast %cst : f32 to vector<64x128xf32>
    %c0_i32 = arith.constant 0 : i32
    %2 = arith.addi %0, %c0_i32 : i32
    %c0 = arith.constant 0 : index
    %3 = arith.index_cast %2 : i32 to index
    %c0_0 = arith.constant 0 : index
    %c0_1 = arith.constant 0 : index
    %4 = vector.load %arg3[%c0, %3, %c0_0, %c0_1] : memref<1x18x18x4xbf16, #tpu.memory_space<vmem>>, vector<1x4x18x4xbf16>
    %5 = vector.shape_cast %4 : vector<1x4x18x4xbf16> to vector<4x18x4xbf16>
    %6 = vector.extract_strided_slice %5 {offsets = [0, 0, 0], sizes = [4, 16, 4], strides = [1, 1, 1]} : vector<4x18x4xbf16> to vector<4x16x4xbf16>
    %7 = vector.shape_cast %6 : vector<4x16x4xbf16> to vector<64x4xbf16>
    %c0_2 = arith.constant 0 : index
    %c0_3 = arith.constant 0 : index
    %c0_4 = arith.constant 0 : index
    %c0_5 = arith.constant 0 : index
    %8 = vector.load %arg4[%c0_2, %c0_3, %c0_4, %c0_5] : memref<3x3x4x128xbf16, #tpu.memory_space<vmem>>, vector<1x1x4x128xbf16>
    %9 = vector.shape_cast %8 : vector<1x1x4x128xbf16> to vector<4x128xbf16>
    %cst_6 = arith.constant dense<0.000000e+00> : vector<64x128xf32>
    %10 = tpu.matmul %7, %9, %cst_6 {dimension_numbers = #tpu.dot_dimension_numbers<[1], [0], [0], [1], [0, 0, 1, 1], [], []>} : vector<64x4xbf16>, vector<4x128xbf16>, vector<64x128xf32> -> vector<64x128xf32>
    %11 = arith.addf %1, %10 : vector<64x128xf32>
    %12 = vector.extract_strided_slice %5 {offsets = [0, 1, 0], sizes = [4, 16, 4], strides = [1, 1, 1]} : vector<4x18x4xbf16> to vector<4x16x4xbf16>
    %13 = vector.shape_cast %12 : vector<4x16x4xbf16> to vector<64x4xbf16>
    %c0_7 = arith.constant 0 : index
    %c1 = arith.constant 1 : index
    %c0_8 = arith.constant 0 : index
    %c0_9 = arith.constant 0 : index
    %14 = vector.load %arg4[%c0_7, %c1, %c0_8, %c0_9] : memref<3x3x4x128xbf16, #tpu.memory_space<vmem>>, vector<1x1x4x128xbf16>
    %15 = vector.shape_cast %14 : vector<1x1x4x128xbf16> to vector<4x128xbf16>
    %cst_10 = arith.constant dense<0.000000e+00> : vector<64x128xf32>
    %16 = tpu.matmul %13, %15, %cst_10 {dimension_numbers = #tpu.dot_dimension_numbers<[1], [0], [0], [1], [0, 0, 1, 1], [], []>} : vector<64x4xbf16>, vector<4x128xbf16>, vector<64x128xf32> -> vector<64x128xf32>
    %17 = arith.addf %11, %16 : vector<64x128xf32>
    %18 = vector.extract_strided_slice %5 {offsets = [0, 2, 0], sizes = [4, 16, 4], strides = [1, 1, 1]} : vector<4x18x4xbf16> to vector<4x16x4xbf16>
    %19 = vector.shape_cast %18 : vector<4x16x4xbf16> to vector<64x4xbf16>
    %c0_11 = arith.constant 0 : index
    %c2 = arith.constant 2 : index
    %c0_12 = arith.constant 0 : index
    %c0_13 = arith.constant 0 : index
    %20 = vector.load %arg4[%c0_11, %c2, %c0_12, %c0_13] : memref<3x3x4x128xbf16, #tpu.memory_space<vmem>>, vector<1x1x4x128xbf16>
    %21 = vector.shape_cast %20 : vector<1x1x4x128xbf16> to vector<4x128xbf16>
    %cst_14 = arith.constant dense<0.000000e+00> : vector<64x128xf32>
    %22 = tpu.matmul %19, %21, %cst_14 {dimension_numbers = #tpu.dot_dimension_numbers<[1], [0], [0], [1], [0, 0, 1, 1], [], []>} : vector<64x4xbf16>, vector<4x128xbf16>, vector<64x128xf32> -> vector<64x128xf32>
    %23 = arith.addf %17, %22 : vector<64x128xf32>
    %c1_i32 = arith.constant 1 : i32
    %24 = arith.addi %0, %c1_i32 : i32
    %c0_15 = arith.constant 0 : index
    %25 = arith.index_cast %24 : i32 to index
    %c0_16 = arith.constant 0 : index
    %c0_17 = arith.constant 0 : index
    %26 = vector.load %arg3[%c0_15, %25, %c0_16, %c0_17] : memref<1x18x18x4xbf16, #tpu.memory_space<vmem>>, vector<1x4x18x4xbf16>
    %27 = vector.shape_cast %26 : vector<1x4x18x4xbf16> to vector<4x18x4xbf16>
    %28 = vector.extract_strided_slice %27 {offsets = [0, 0, 0], sizes = [4, 16, 4], strides = [1, 1, 1]} : vector<4x18x4xbf16> to vector<4x16x4xbf16>
    %29 = vector.shape_cast %28 : vector<4x16x4xbf16> to vector<64x4xbf16>
    %c1_18 = arith.constant 1 : index
    %c0_19 = arith.constant 0 : index
    %c0_20 = arith.constant 0 : index
    %c0_21 = arith.constant 0 : index
    %30 = vector.load %arg4[%c1_18, %c0_19, %c0_20, %c0_21] : memref<3x3x4x128xbf16, #tpu.memory_space<vmem>>, vector<1x1x4x128xbf16>
    %31 = vector.shape_cast %30 : vector<1x1x4x128xbf16> to vector<4x128xbf16>
    %cst_22 = arith.constant dense<0.000000e+00> : vector<64x128xf32>
    %32 = tpu.matmul %29, %31, %cst_22 {dimension_numbers = #tpu.dot_dimension_numbers<[1], [0], [0], [1], [0, 0, 1, 1], [], []>} : vector<64x4xbf16>, vector<4x128xbf16>, vector<64x128xf32> -> vector<64x128xf32>
    %33 = arith.addf %23, %32 : vector<64x128xf32>
    %34 = vector.extract_strided_slice %27 {offsets = [0, 1, 0], sizes = [4, 16, 4], strides = [1, 1, 1]} : vector<4x18x4xbf16> to vector<4x16x4xbf16>
    %35 = vector.shape_cast %34 : vector<4x16x4xbf16> to vector<64x4xbf16>
    %c1_23 = arith.constant 1 : index
    %c1_24 = arith.constant 1 : index
    %c0_25 = arith.constant 0 : index
    %c0_26 = arith.constant 0 : index
    %36 = vector.load %arg4[%c1_23, %c1_24, %c0_25, %c0_26] : memref<3x3x4x128xbf16, #tpu.memory_space<vmem>>, vector<1x1x4x128xbf16>
    %37 = vector.shape_cast %36 : vector<1x1x4x128xbf16> to vector<4x128xbf16>
    %cst_27 = arith.constant dense<0.000000e+00> : vector<64x128xf32>
    %38 = tpu.matmul %35, %37, %cst_27 {dimension_numbers = #tpu.dot_dimension_numbers<[1], [0], [0], [1], [0, 0, 1, 1], [], []>} : vector<64x4xbf16>, vector<4x128xbf16>, vector<64x128xf32> -> vector<64x128xf32>
    %39 = arith.addf %33, %38 : vector<64x128xf32>
    %40 = vector.extract_strided_slice %27 {offsets = [0, 2, 0], sizes = [4, 16, 4], strides = [1, 1, 1]} : vector<4x18x4xbf16> to vector<4x16x4xbf16>
    %41 = vector.shape_cast %40 : vector<4x16x4xbf16> to vector<64x4xbf16>
    %c1_28 = arith.constant 1 : index
    %c2_29 = arith.constant 2 : index
    %c0_30 = arith.constant 0 : index
    %c0_31 = arith.constant 0 : index
    %42 = vector.load %arg4[%c1_28, %c2_29, %c0_30, %c0_31] : memref<3x3x4x128xbf16, #tpu.memory_space<vmem>>, vector<1x1x4x128xbf16>
    %43 = vector.shape_cast %42 : vector<1x1x4x128xbf16> to vector<4x128xbf16>
    %cst_32 = arith.constant dense<0.000000e+00> : vector<64x128xf32>
    %44 = tpu.matmul %41, %43, %cst_32 {dimension_numbers = #tpu.dot_dimension_numbers<[1], [0], [0], [1], [0, 0, 1, 1], [], []>} : vector<64x4xbf16>, vector<4x128xbf16>, vector<64x128xf32> -> vector<64x128xf32>
    %45 = arith.addf %39, %44 : vector<64x128xf32>
    %c2_i32 = arith.constant 2 : i32
    %46 = arith.addi %0, %c2_i32 : i32
    %c0_33 = arith.constant 0 : index
    %47 = arith.index_cast %46 : i32 to index
    %c0_34 = arith.constant 0 : index
    %c0_35 = arith.constant 0 : index
    %48 = vector.load %arg3[%c0_33, %47, %c0_34, %c0_35] : memref<1x18x18x4xbf16, #tpu.memory_space<vmem>>, vector<1x4x18x4xbf16>
    %49 = vector.shape_cast %48 : vector<1x4x18x4xbf16> to vector<4x18x4xbf16>
    %50 = vector.extract_strided_slice %49 {offsets = [0, 0, 0], sizes = [4, 16, 4], strides = [1, 1, 1]} : vector<4x18x4xbf16> to vector<4x16x4xbf16>
    %51 = vector.shape_cast %50 : vector<4x16x4xbf16> to vector<64x4xbf16>
    %c2_36 = arith.constant 2 : index
    %c0_37 = arith.constant 0 : index
    %c0_38 = arith.constant 0 : index
    %c0_39 = arith.constant 0 : index
    %52 = vector.load %arg4[%c2_36, %c0_37, %c0_38, %c0_39] : memref<3x3x4x128xbf16, #tpu.memory_space<vmem>>, vector<1x1x4x128xbf16>
    %53 = vector.shape_cast %52 : vector<1x1x4x128xbf16> to vector<4x128xbf16>
    %cst_40 = arith.constant dense<0.000000e+00> : vector<64x128xf32>
    %54 = tpu.matmul %51, %53, %cst_40 {dimension_numbers = #tpu.dot_dimension_numbers<[1], [0], [0], [1], [0, 0, 1, 1], [], []>} : vector<64x4xbf16>, vector<4x128xbf16>, vector<64x128xf32> -> vector<64x128xf32>
    %55 = arith.addf %45, %54 : vector<64x128xf32>
    %56 = vector.extract_strided_slice %49 {offsets = [0, 1, 0], sizes = [4, 16, 4], strides = [1, 1, 1]} : vector<4x18x4xbf16> to vector<4x16x4xbf16>
    %57 = vector.shape_cast %56 : vector<4x16x4xbf16> to vector<64x4xbf16>
    %c2_41 = arith.constant 2 : index
    %c1_42 = arith.constant 1 : index
    %c0_43 = arith.constant 0 : index
    %c0_44 = arith.constant 0 : index
    %58 = vector.load %arg4[%c2_41, %c1_42, %c0_43, %c0_44] : memref<3x3x4x128xbf16, #tpu.memory_space<vmem>>, vector<1x1x4x128xbf16>
    %59 = vector.shape_cast %58 : vector<1x1x4x128xbf16> to vector<4x128xbf16>
    %cst_45 = arith.constant dense<0.000000e+00> : vector<64x128xf32>
    %60 = tpu.matmul %57, %59, %cst_45 {dimension_numbers = #tpu.dot_dimension_numbers<[1], [0], [0], [1], [0, 0, 1, 1], [], []>} : vector<64x4xbf16>, vector<4x128xbf16>, vector<64x128xf32> -> vector<64x128xf32>
    %61 = arith.addf %55, %60 : vector<64x128xf32>
    %62 = vector.extract_strided_slice %49 {offsets = [0, 2, 0], sizes = [4, 16, 4], strides = [1, 1, 1]} : vector<4x18x4xbf16> to vector<4x16x4xbf16>
    %63 = vector.shape_cast %62 : vector<4x16x4xbf16> to vector<64x4xbf16>
    %c2_46 = arith.constant 2 : index
    %c2_47 = arith.constant 2 : index
    %c0_48 = arith.constant 0 : index
    %c0_49 = arith.constant 0 : index
    %64 = vector.load %arg4[%c2_46, %c2_47, %c0_48, %c0_49] : memref<3x3x4x128xbf16, #tpu.memory_space<vmem>>, vector<1x1x4x128xbf16>
    %65 = vector.shape_cast %64 : vector<1x1x4x128xbf16> to vector<4x128xbf16>
    %cst_50 = arith.constant dense<0.000000e+00> : vector<64x128xf32>
    %66 = tpu.matmul %63, %65, %cst_50 {dimension_numbers = #tpu.dot_dimension_numbers<[1], [0], [0], [1], [0, 0, 1, 1], [], []>} : vector<64x4xbf16>, vector<4x128xbf16>, vector<64x128xf32> -> vector<64x128xf32>
    %67 = arith.addf %61, %66 : vector<64x128xf32>
    %c0_51 = arith.constant 0 : index
    %c0_52 = arith.constant 0 : index
    %68 = vector.load %arg5[%c0_51, %c0_52] : memref<2x128xf32, #tpu.memory_space<vmem>>, vector<1x128xf32>
    %69 = vector.broadcast %68 : vector<1x128xf32> to vector<64x128xf32>
    %70 = arith.mulf %67, %69 : vector<64x128xf32>
    %c1_53 = arith.constant 1 : index
    %c0_54 = arith.constant 0 : index
    %71 = vector.load %arg5[%c1_53, %c0_54] : memref<2x128xf32, #tpu.memory_space<vmem>>, vector<1x128xf32>
    %72 = vector.broadcast %71 : vector<1x128xf32> to vector<64x128xf32>
    %73 = arith.addf %70, %72 : vector<64x128xf32>
    %c0_55 = arith.constant 0 : index
    %c0_56 = arith.constant 0 : index
    %c0_57 = arith.constant 0 : index
    %74 = vector.load %arg6[%c0_55, %c0_56, %c0_57] : memref<1x64x128xf32, #tpu.memory_space<vmem>>, vector<1x64x128xf32>
    %75 = vector.shape_cast %74 : vector<1x64x128xf32> to vector<64x128xf32>
    %76 = vector.shape_cast %73 : vector<64x128xf32> to vector<1x64x128xf32>
    tpu.vector_store %arg6[%c0_55, %c0_56, %c0_57], %76 {strides = array<i32>} : memref<1x64x128xf32, #tpu.memory_space<vmem>>, vector<1x64x128xf32>,
    return
  }
  func.func @transform_0(%arg0: i32, %arg1: i32, %arg2: i32) -> (i32, i32, i32, i32) {
    %c0_i32 = arith.constant 0 : i32
    %c0_i32_0 = arith.constant 0 : i32
    %c0_i32_1 = arith.constant 0 : i32
    %c0_i32_2 = arith.constant 0 : i32
    return %arg0, %c0_i32, %c0_i32_0, %c0_i32_1 : i32, i32, i32, i32
  }
  func.func @transform_1(%arg0: i32, %arg1: i32, %arg2: i32) -> (i32, i32, i32, i32) {
    %c0_i32 = arith.constant 0 : i32
    %c0_i32_0 = arith.constant 0 : i32
    %c0_i32_1 = arith.constant 0 : i32
    %c0_i32_2 = arith.constant 0 : i32
    return %c0_i32, %c0_i32_0, %c0_i32_1, %arg1 : i32, i32, i32, i32
  }
  func.func @transform_2(%arg0: i32, %arg1: i32, %arg2: i32) -> (i32, i32) {
    %c0_i32 = arith.constant 0 : i32
    %c0_i32_0 = arith.constant 0 : i32
    return %c0_i32, %arg1 : i32, i32
  }
  func.func @transform_3(%arg0: i32, %arg1: i32, %arg2: i32) -> (i32, i32, i32) {
    %c0_i32 = arith.constant 0 : i32
    return %arg0, %arg2, %arg1 : i32, i32, i32
  }
}

module attributes {stable_mosaic.version = 11 : i64} {
  func.func @_qconv_fused_kernel(%arg0: i32, %arg1: i32, %arg2: i32, %arg3: memref<1x18x18x4xbf16, #tpu.memory_space<vmem>>, %arg4: memref<3x3x4x128xbf16, #tpu.memory_space<vmem>>, %arg5: memref<2x128xf32, #tpu.memory_space<vmem>>, %arg6: memref<1x64x128xf32, #tpu.memory_space<vmem>>) attributes {dimension_semantics = [#tpu.dimension_semantics<parallel>, #tpu.dimension_semantics<parallel>, #tpu.dimension_semantics<parallel>], iteration_bounds = array<i64: 2, 1, 4>, scalar_prefetch = 0 : i64, scratch_operands = 0 : i64, tpu.core_type = #tpu.core_type<tc>, window_params = [{transform_indices = @transform_0, window_bounds = array<i64: 1, 18, 18, 4>}, {transform_indices = @transform_1, window_bounds = array<i64: 3, 3, 4, 128>}, {transform_indices = @transform_2, window_bounds = array<i64: 2, 128>}, {transform_indices = @transform_3, window_bounds = array<i64: 1, 64, 128>}]} {
    %c4_i32 = arith.constant 4 : i32
    %0 = arith.muli %arg2, %c4_i32 : i32
    %cst = arith.constant 0.000000e+00 : f32
    %1 = vector.broadcast %cst : f32 to vector<64x128xf32>
    %c0_i32 = arith.constant 0 : i32
    %2 = arith.addi %0, %c0_i32 : i32
    %c0 = arith.constant 0 : index
    %3 = arith.index_cast %2 : i32 to index
    %c0_0 = arith.constant 0 : index
    %c0_1 = arith.constant 0 : index
    %4 = vector.load %arg3[%c0, %3, %c0_0, %c0_1] : memref<1x18x18x4xbf16, #tpu.memory_space<vmem>>, vector<1x4x18x4xbf16>
    %5 = vector.shape_cast %4 : vector<1x4x18x4xbf16> to vector<4x18x4xbf16>
    %6 = vector.extract_strided_slice %5 {offsets = [0, 0, 0], sizes = [4, 16, 4], strides = [1, 1, 1]} : vector<4x18x4xbf16> to vector<4x16x4xbf16>
    %7 = vector.shape_cast %6 : vector<4x16x4xbf16> to vector<64x4xbf16>
    %c0_2 = arith.constant 0 : index
    %c0_3 = arith.constant 0 : index
    %c0_4 = arith.constant 0 : index
    %c0_5 = arith.constant 0 : index
    %8 = vector.load %arg4[%c0_2, %c0_3, %c0_4, %c0_5] : memref<3x3x4x128xbf16, #tpu.memory_space<vmem>>, vector<1x1x4x128xbf16>
    %9 = vector.shape_cast %8 : vector<1x1x4x128xbf16> to vector<4x128xbf16>
    %cst_6 = arith.constant dense<0.000000e+00> : vector<64x128xf32>
    %10 = tpu.matmul %7, %9, %cst_6 {dimension_numbers = #tpu.dot_dimension_numbers<[1], [0], [0], [1], [0, 0, 1, 1], [], []>} : vector<64x4xbf16>, vector<4x128xbf16>, vector<64x128xf32> -> vector<64x128xf32>
    %11 = arith.addf %1, %10 : vector<64x128xf32>
    %12 = vector.extract_strided_slice %5 {offsets = [0, 1, 0], sizes = [4, 16, 4], strides = [1, 1, 1]} : vector<4x18x4xbf16> to vector<4x16x4xbf16>
    %13 = vector.shape_cast %12 : vector<4x16x4xbf16> to vector<64x4xbf16>
    %c0_7 = arith.constant 0 : index
    %c1 = arith.constant 1 : index
    %c0_8 = arith.constant 0 : index
    %c0_9 = arith.constant 0 : index
    %14 = vector.load %arg4[%c0_7, %c1, %c0_8, %c0_9] : memref<3x3x4x128xbf16, #tpu.memory_space<vmem>>, vector<1x1x4x128xbf16>
    %15 = vector.shape_cast %14 : vector<1x1x4x128xbf16> to vector<4x128xbf16>
    %cst_10 = arith.constant dense<0.000000e+00> : vector<64x128xf32>
    %16 = tpu.matmul %13, %15, %cst_10 {dimension_numbers = #tpu.dot_dimension_numbers<[1], [0], [0], [1], [0, 0, 1, 1], [], []>} : vector<64x4xbf16>, vector<4x128xbf16>, vector<64x128xf32> -> vector<64x128xf32>
    %17 = arith.addf %11, %16 : vector<64x128xf32>
    %18 = vector.extract_strided_slice %5 {offsets = [0, 2, 0], sizes = [4, 16, 4], strides = [1, 1, 1]} : vector<4x18x4xbf16> to vector<4x16x4xbf16>
    %19 = vector.shape_cast %18 : vector<4x16x4xbf16> to vector<64x4xbf16>
    %c0_11 = arith.constant 0 : index
    %c2 = arith.constant 2 : index
    %c0_12 = arith.constant 0 : index
    %c0_13 = arith.constant 0 : index
    %20 = vector.load %arg4[%c0_11, %c2, %c0_12, %c0_13] : memref<3x3x4x128xbf16, #tpu.memory_space<vmem>>, vector<1x1x4x128xbf16>
    %21 = vector.shape_cast %20 : vector<1x1x4x128xbf16> to vector<4x128xbf16>
    %cst_14 = arith.constant dense<0.000000e+00> : vector<64x128xf32>
    %22 = tpu.matmul %19, %21, %cst_14 {dimension_numbers = #tpu.dot_dimension_numbers<[1], [0], [0], [1], [0, 0, 1, 1], [], []>} : vector<64x4xbf16>, vector<4x128xbf16>, vector<64x128xf32> -> vector<64x128xf32>
    %23 = arith.addf %17, %22 : vector<64x128xf32>
    %c1_i32 = arith.constant 1 : i32
    %24 = arith.addi %0, %c1_i32 : i32
    %c0_15 = arith.constant 0 : index
    %25 = arith.index_cast %24 : i32 to index
    %c0_16 = arith.constant 0 : index
    %c0_17 = arith.constant 0 : index
    %26 = vector.load %arg3[%c0_15, %25, %c0_16, %c0_17] : memref<1x18x18x4xbf16, #tpu.memory_space<vmem>>, vector<1x4x18x4xbf16>
    %27 = vector.shape_cast %26 : vector<1x4x18x4xbf16> to vector<4x18x4xbf16>
    %28 = vector.extract_strided_slice %27 {offsets = [0, 0, 0], sizes = [4, 16, 4], strides = [1, 1, 1]} : vector<4x18x4xbf16> to vector<4x16x4xbf16>
    %29 = vector.shape_cast %28 : vector<4x16x4xbf16> to vector<64x4xbf16>
    %c1_18 = arith.constant 1 : index
    %c0_19 = arith.constant 0 : index
    %c0_20 = arith.constant 0 : index
    %c0_21 = arith.constant 0 : index
    %30 = vector.load %arg4[%c1_18, %c0_19, %c0_20, %c0_21] : memref<3x3x4x128xbf16, #tpu.memory_space<vmem>>, vector<1x1x4x128xbf16>
    %31 = vector.shape_cast %30 : vector<1x1x4x128xbf16> to vector<4x128xbf16>
    %cst_22 = arith.constant dense<0.000000e+00> : vector<64x128xf32>
    %32 = tpu.matmul %29, %31, %cst_22 {dimension_numbers = #tpu.dot_dimension_numbers<[1], [0], [0], [1], [0, 0, 1, 1], [], []>} : vector<64x4xbf16>, vector<4x128xbf16>, vector<64x128xf32> -> vector<64x128xf32>
    %33 = arith.addf %23, %32 : vector<64x128xf32>
    %34 = vector.extract_strided_slice %27 {offsets = [0, 1, 0], sizes = [4, 16, 4], strides = [1, 1, 1]} : vector<4x18x4xbf16> to vector<4x16x4xbf16>
    %35 = vector.shape_cast %34 : vector<4x16x4xbf16> to vector<64x4xbf16>
    %c1_23 = arith.constant 1 : index
    %c1_24 = arith.constant 1 : index
    %c0_25 = arith.constant 0 : index
    %c0_26 = arith.constant 0 : index
    %36 = vector.load %arg4[%c1_23, %c1_24, %c0_25, %c0_26] : memref<3x3x4x128xbf16, #tpu.memory_space<vmem>>, vector<1x1x4x128xbf16>
    %37 = vector.shape_cast %36 : vector<1x1x4x128xbf16> to vector<4x128xbf16>
    %cst_27 = arith.constant dense<0.000000e+00> : vector<64x128xf32>
    %38 = tpu.matmul %35, %37, %cst_27 {dimension_numbers = #tpu.dot_dimension_numbers<[1], [0], [0], [1], [0, 0, 1, 1], [], []>} : vector<64x4xbf16>, vector<4x128xbf16>, vector<64x128xf32> -> vector<64x128xf32>
    %39 = arith.addf %33, %38 : vector<64x128xf32>
    %40 = vector.extract_strided_slice %27 {offsets = [0, 2, 0], sizes = [4, 16, 4], strides = [1, 1, 1]} : vector<4x18x4xbf16> to vector<4x16x4xbf16>
    %41 = vector.shape_cast %40 : vector<4x16x4xbf16> to vector<64x4xbf16>
    %c1_28 = arith.constant 1 : index
    %c2_29 = arith.constant 2 : index
    %c0_30 = arith.constant 0 : index
    %c0_31 = arith.constant 0 : index
    %42 = vector.load %arg4[%c1_28, %c2_29, %c0_30, %c0_31] : memref<3x3x4x128xbf16, #tpu.memory_space<vmem>>, vector<1x1x4x128xbf16>
    %43 = vector.shape_cast %42 : vector<1x1x4x128xbf16> to vector<4x128xbf16>
    %cst_32 = arith.constant dense<0.000000e+00> : vector<64x128xf32>
    %44 = tpu.matmul %41, %43, %cst_32 {dimension_numbers = #tpu.dot_dimension_numbers<[1], [0], [0], [1], [0, 0, 1, 1], [], []>} : vector<64x4xbf16>, vector<4x128xbf16>, vector<64x128xf32> -> vector<64x128xf32>
    %45 = arith.addf %39, %44 : vector<64x128xf32>
    %c2_i32 = arith.constant 2 : i32
    %46 = arith.addi %0, %c2_i32 : i32
    %c0_33 = arith.constant 0 : index
    %47 = arith.index_cast %46 : i32 to index
    %c0_34 = arith.constant 0 : index
    %c0_35 = arith.constant 0 : index
    %48 = vector.load %arg3[%c0_33, %47, %c0_34, %c0_35] : memref<1x18x18x4xbf16, #tpu.memory_space<vmem>>, vector<1x4x18x4xbf16>
    %49 = vector.shape_cast %48 : vector<1x4x18x4xbf16> to vector<4x18x4xbf16>
    %50 = vector.extract_strided_slice %49 {offsets = [0, 0, 0], sizes = [4, 16, 4], strides = [1, 1, 1]} : vector<4x18x4xbf16> to vector<4x16x4xbf16>
    %51 = vector.shape_cast %50 : vector<4x16x4xbf16> to vector<64x4xbf16>
    %c2_36 = arith.constant 2 : index
    %c0_37 = arith.constant 0 : index
    %c0_38 = arith.constant 0 : index
    %c0_39 = arith.constant 0 : index
    %52 = vector.load %arg4[%c2_36, %c0_37, %c0_38, %c0_39] : memref<3x3x4x128xbf16, #tpu.memory_space<vmem>>, vector<1x1x4x128xbf16>
    %53 = vector.shape_cast %52 : vector<1x1x4x128xbf16> to vector<4x128xbf16>
    %cst_40 = arith.constant dense<0.000000e+00> : vector<64x128xf32>
    %54 = tpu.matmul %51, %53, %cst_40 {dimension_numbers = #tpu.dot_dimension_numbers<[1], [0], [0], [1], [0, 0, 1, 1], [], []>} : vector<64x4xbf16>, vector<4x128xbf16>, vector<64x128xf32> -> vector<64x128xf32>
    %55 = arith.addf %45, %54 : vector<64x128xf32>
    %56 = vector.extract_strided_slice %49 {offsets = [0, 1, 0], sizes = [4, 16, 4], strides = [1, 1, 1]} : vector<4x18x4xbf16> to vector<4x16x4xbf16>
    %57 = vector.shape_cast %56 : vector<4x16x4xbf16> to vector<64x4xbf16>
    %c2_41 = arith.constant 2 : index
    %c1_42 = arith.constant 1 : index
    %c0_43 = arith.constant 0 : index
    %c0_44 = arith.constant 0 : index
    %58 = vector.load %arg4[%c2_41, %c1_42, %c0_43, %c0_44] : memref<3x3x4x128xbf16, #tpu.memory_space<vmem>>, vector<1x1x4x128xbf16>
    %59 = vector.shape_cast %58 : vector<1x1x4x128xbf16> to vector<4x128xbf16>
    %cst_45 = arith.constant dense<0.000000e+00> : vector<64x128xf32>
    %60 = tpu.matmul %57, %59, %cst_45 {dimension_numbers = #tpu.dot_dimension_numbers<[1], [0], [0], [1], [0, 0, 1, 1], [], []>} : vector<64x4xbf16>, vector<4x128xbf16>, vector<64x128xf32> -> vector<64x128xf32>
    %61 = arith.addf %55, %60 : vector<64x128xf32>
    %62 = vector.extract_strided_slice %49 {offsets = [0, 2, 0], sizes = [4, 16, 4], strides = [1, 1, 1]} : vector<4x18x4xbf16> to vector<4x16x4xbf16>
    %63 = vector.shape_cast %62 : vector<4x16x4xbf16> to vector<64x4xbf16>
    %c2_46 = arith.constant 2 : index
    %c2_47 = arith.constant 2 : index
    %c0_48 = arith.constant 0 : index
    %c0_49 = arith.constant 0 : index
    %64 = vector.load %arg4[%c2_46, %c2_47, %c0_48, %c0_49] : memref<3x3x4x128xbf16, #tpu.memory_space<vmem>>, vector<1x1x4x128xbf16>
    %65 = vector.shape_cast %64 : vector<1x1x4x128xbf16> to vector<4x128xbf16>
    %cst_50 = arith.constant dense<0.000000e+00> : vector<64x128xf32>
    %66 = tpu.matmul %63, %65, %cst_50 {dimension_numbers = #tpu.dot_dimension_numbers<[1], [0], [0], [1], [0, 0, 1, 1], [], []>} : vector<64x4xbf16>, vector<4x128xbf16>, vector<64x128xf32> -> vector<64x128xf32>
    %67 = arith.addf %61, %66 : vector<64x128xf32>
    %c0_51 = arith.constant 0 : index
    %c0_52 = arith.constant 0 : index
    %68 = vector.load %arg5[%c0_51, %c0_52] : memref<2x128xf32, #tpu.memory_space<vmem>>, vector<1x128xf32>
    %69 = vector.broadcast %68 : vector<1x128xf32> to vector<64x128xf32>
    %70 = arith.mulf %67, %69 : vector<64x128xf32>
    %c1_53 = arith.constant 1 : index
    %c0_54 = arith.constant 0 : index
    %71 = vector.load %arg5[%c1_53, %c0_54] : memref<2x128xf32, #tpu.memory_space<vmem>>, vector<1x128xf32>
    %72 = vector.broadcast %71 : vector<1x128xf32> to vector<64x128xf32>
    %73 = arith.addf %70, %72 : vector<64x128xf32>
    %c0_55 = arith.constant 0 : index
    %c0_56 = arith.constant 0 : index
    %c0_57 = arith.constant 0 : index
    %74 = vector.load %arg6[%c0_55, %c0_56, %c0_57] : memref<1x64x128xf32, #tpu.memory_space<vmem>>, vector<1x64x128xf32>
    %75 = vector.shape_cast %74 : vector<1x64x128xf32> to vector<64x128xf32>
    %76 = vector.shape_cast %73 : vector<64x128xf32> to vector<1x64x128xf32>
    tpu.vector_store %arg6[%c0_55, %c0_56, %c0_57], %76 {strides = array<i32>} : memref<1x64x128xf32, #tpu.memory_space<vmem>>, vector<1x64x128xf32>,
    return
  }
  func.func @transform_0(%arg0: i32, %arg1: i32, %arg2: i32) -> (i32, i32, i32, i32) {
    %c0_i32 = arith.constant 0 : i32
    %c0_i32_0 = arith.constant 0 : i32
    %c0_i32_1 = arith.constant 0 : i32
    %c0_i32_2 = arith.constant 0 : i32
    return %arg0, %c0_i32, %c0_i32_0, %c0_i32_1 : i32, i32, i32, i32
  }
  func.func @transform_1(%arg0: i32, %arg1: i32, %arg2: i32) -> (i32, i32, i32, i32) {
    %c0_i32 = arith.constant 0 : i32
    %c0_i32_0 = arith.constant 0 : i32
    %c0_i32_1 = arith.constant 0 : i32
    %c0_i32_2 = arith.constant 0 : i32
    return %c0_i32, %c0_i32_0, %c0_i32_1, %arg1 : i32, i32, i32, i32
  }
  func.func @transform_2(%arg0: i32, %arg1: i32, %arg2: i32) -> (i32, i32) {
    %c0_i32 = arith.constant 0 : i32
    %c0_i32_0 = arith.constant 0 : i32
    return %c0_i32, %arg1 : i32, i32
  }
  func.func @transform_3(%arg0: i32, %arg1: i32, %arg2: i32) -> (i32, i32, i32) {
    %c0_i32 = arith.constant 0 : i32
    return %arg0, %arg2, %arg1 : i32, i32, i32
  }
}

</mosaic_0001>

<bundles_post_ra>
// kernel: tpu_custom_call.1
= control target key start
LH: loop header
LB: loop body
LE: loop exit
PB: predicated region body
PF: predicated region fallthrough
CT: control target
= control target key end

     0   :  { %8 = vsyncpa [#allocation3], 0  ;;  %s2947_s0 = inlined_call_operand.vmem [shape: bf16[2,18,18,4], index: 0, kind: input, shape index: {}]   ;;  %s2948_s1 = inlined_call_operand.vmem [shape: bf16[3,3,4,128], index: 1, kind: input, shape index: {}]   ;;  %s2949_s2 = inlined_call_operand.vmem [shape: f32[2,128], index: 2, kind: input, shape index: {}]   ;;  %s2950_s3 = inlined_call_operand.hbm [shape: f32[2,256,128], index: 3, kind: output, shape index: {}]  }
   0x1   :  { %10 = vsyncpa [#allocation3 + $0x1], 0  ;;  %s2321_s12 = smov 0   ;;  %s2323_s13 = smov 0  }
   0x2   :  { %s2325_s14 = smov 0   ;;  %s2327_s15 = smov 0  }
   0x3   :  { %s2329_s16 = smov 0   ;;  %s2331_s17 = smov 0  }
   0x4   :  { %s2333_s18 = smov 0   ;;  %s2335_s19 = smov 0  }
   0x5 LB: > { %s1764_s20 = sadd.s32 4294967295, %s2296_s19   ;;  %s1765_s21 = sadd.s32 4294967294, %s2296_s19   ;;  %s2296_s19 = sphi %s2335_s19, %s16_s19   ;;  %s2292_s18 = sphi %s2333_s18, %s2963_s18   ;;  %s2288_s17 = sphi %s2331_s17, %s2962_s17   ;;  %s2284_s16 = sphi %s2329_s16, %s2961_s16   ;;  %s2280_s15 = sphi %s2327_s15, %s2960_s15   ;;  %s2276_s14 = sphi %s2325_s14, %s2959_s14   ;;  %s2272_s13 = sphi %s2323_s13, %s2958_s13   ;;  %s2268_s12 = sphi %s2321_s12, %s2957_s12  }
   0x6   : > { %s28_s22 = sadd.s32 1, %s2288_s17  ;;  %s35_s23 = sadd.s32 1, %s2292_s18 }
   0x7   : > { %p29_p0 = scmp.ge.s32.totalorder %s28_s22, 4  ;;  %p134_p1 = scmp.ne.s32.totalorder %s2276_s14, %s2272_s13 }
   0x8   : > { %p135_p2 = scmp.eq.s32.totalorder %s1764_s20, 7  ;;  %p140_p5 = scmp.ne.s32.totalorder %s2272_s13, %s2268_s12 }
   0x9   : > { %s2965_s22 = smov (%p29_p0, %s28_s22), 0  ;;  %s2967_s23 = smov (!%p29_p0, %s35_s23), %s2292_s18 }
   0xa   : > { %s118_s24 = ssub.s32 %s2288_s17, %s2965_s22  ;;  %p2372_p3 = por %p135_p2, %p134_p1 }
   0xb   : > { %p37_p4 = scmp.ge.s32.totalorder %s2967_s23, 2  ;;  %p141_p6 = scmp.eq.s32.totalorder %s1765_s21, 7 }
   0xc   : > { %p1770_p7 = scmp.ge.s32.totalorder %s2296_s19, 1  ;;  %p181_p9 = scmp.lt.s32.totalorder %s2296_s19, 9 }
   0xd   : > { %s2969_s23 = smov (%p37_p4, %s2967_s23), 0  ;;  %p2381_p8 = por %p141_p6, %p140_p5 }
   0xe   : > { %s117_s27 = ssub.s32 %s2292_s18, %s2969_s23  ;;  %s124_s28 = sadd.s32 1, %s2276_s14 }
   0xf   : > { %s119_s29 = sor.u32 %s118_s24, %s117_s27  ;;  %p182_p10 = pnand %p1770_p7, %p181_p9 }
  0x10   : > { %p122_p11 = scmp.eq.s32.totalorder %s119_s29, 0  ;;  %v1776_v0 = vld [vmem:[%s2948_s1 + $0x2] sm:$0x3] (!%p182_p10)  ;;  %vm371_vm0 = vcmask (!%p182_p10), 1041408   ;;  %v2398_v1 = vld [vmem:[%s2948_s1 + $0x8] sm:$0x3] (!%p182_p10) }
  0x11   : > { %185 = sbr.rel (%p182_p10) target bundleno = 360 (0x168), region = 32  ;;  %p213_p12 = scmp.lt.s32.totalorder (!%p182_p10), %s2284_s16, 1  ;;  %2106 = vmatprep.subr.msk.bf16.mxu1 (!%p182_p10), %vm371_vm0, %v1776_v0  ;;  %2110 = vmatprep.subr.msk.bf16.mxu0 (!%p182_p10), %vm371_vm0, %v2398_v1  ;;  %v373_v2 = vsel (!%p182_p10), %vm371_vm0, %v1776_v0, 0  ;;  %v2407_v3 = vsel (!%p182_p10), %vm371_vm0, %v2398_v1, 0  ;;  %v244_v4 = vld [vmem:[%s2948_s1] sm:$0x3] (!%p182_p10) }
  0x12   : > { %s2390_s30 = scalar_select %p122_p11, %s2276_s14, %s124_s28  }
  0x13   : > { %1951 = vmatpush3.bf16.msra.mxu1 (!%p182_p10), %v373_v2  ;;  %1991 = vmatpush3.bf16.msra.mxu0 (!%p182_p10), %v2407_v3  ;;  %s1904_s11 = smul.u32 (!%p182_p10), 48, %s2280_s15  ;;  %v2419_v5 = vld [vmem:[%s2948_s1 + $0xa] sm:$0x3] (!%p182_p10)  ;;  %vm245_vm1 = vsmask.f32 (!%p182_p10), 3328  ;;  %vm358_vm3 = vcmask (!%p182_p10), 31744  }
  0x14   : > { %2107 = vmatprep.subr.msk.bf16.mxu1 (!%p182_p10), %vm371_vm0, %v244_v4  ;;  %2112 = vmatprep.subr.msk.bf16.mxu0 (!%p182_p10), %vm371_vm0, %v2419_v5  ;;  %vm246_vm2 = vsmask.f32 (!%p182_p10), 7440  ;;  %v2469_v35 = vsel (!%p182_p10), %vm371_vm0, %v244_v4, 0  ;;  %v2498_v63 = vsel (!%p182_p10), %vm371_vm0, %v2419_v5, 0  ;;  %vm544_vm5 = vcmask (!%p182_p10), 1042432   ;;  %s210_s27 = sand.u32 (!%p182_p10), 1, %s2272_s13  }
  0x15   : > { %vm2464_vm4 = vmor (!%p182_p10), %vm245_vm1, %vm246_vm2  ;;  %vm545_vm6 = vcmask (!%p182_p10), 1046532   ;;  %v1896_v31 = vld [vmem:[%s2949_s2] ss:$0 sm:$0xff] (!%p182_p10)  ;;  %s1899_s7 = sshll.u32 (!%p182_p10), %s2280_s15, 3 }
  0x16   : > { %vm2556_vm7 = vmor (!%p182_p10), %vm544_vm5, %vm545_vm6 }
  0x18   : > { %s214_s8 = scalar_select %p213_p12, %s2284_s16, 1 }
  0x1a   : > { %s2116_s24 = smul.u32 216, %s214_s8  ;;  %s1900_s8 = sshll.u32 %s2284_s16, 5 }
  0x1b   : > { %s1641_s10 = sadd.s32 %s1900_s8, %s1899_s7 }
  0x1c   : > { %s217_s29 = scalar_lea.vmem %s2947_s0, %s2116_s24  ;;  %s1901_s15 = sshll.u32 %s1641_s10, 7 }
  0x1d   : > { %s2426_s4 = scalar_lea.vmem %s217_s29, %s1904_s11  ;;  %s2886_s21 = scalar_lea.hbm %s2950_s3, %s1901_s15 }
  0x1e   : > { %v2429_v6 = vld [vmem:[%s2426_s4] sm:$0xf]  ;;  %v2432_v7 = vld [vmem:[%s2426_s4 + $0x4] sm:$0xf]  ;;  %v2435_v8 = vld [vmem:[%s2426_s4 + $0x8] sm:$0x1] }
  0x1f   : > { %v249_v9 = vshrl.u32 %v2429_v6, 16  ;;  %v252_v10 = vshll.u32 %v2429_v6, 16  ;;  %v258_v11 = vshll.u32 %v2432_v7, 16  ;;  %v262_v12 = vshrl.u32 %v2432_v7, 16  ;;  %v2442_v13 = vld [vmem:[%s2426_s4 + $0xc] sm:$0xf] }
  0x20   : > { %v268_v14 = vshll.u32 %v2435_v8, 16  ;;  %v2446_v15 = vld [vmem:[%s2426_s4 + $0x10] sm:$0xf]  ;;  %v2449_v16 = vld [vmem:[%s2426_s4 + $0x14] sm:$0x1]  ;;  %v804_v22 = vshrl.u32 %v2442_v13, 16 }
  0x21   : > { %v251_v17 = vrot.slane %v249_v9, 4  ;;  %v254_v18 = vrot.slane %v252_v10, 5  ;;  %v260_v19 = vrot.slane %v258_v11, 5  ;;  %v264_v20 = vrot.slane %v262_v12, 4  ;;  %v2457_v29 = vld [vmem:[%s2426_s4 + $0xc] sm:$0xf] }
  0x22   : > { %v270_v21 = vrot.slane %v268_v14, 5  ;;  %v807_v23 = vshll.u32 %v2442_v13, 16  ;;  %v813_v24 = vshll.u32 %v2446_v15, 16  ;;  %v817_v27 = vshrl.u32 %v2446_v15, 16  ;;  %v2460_v30 = vld [vmem:[%s2426_s4 + $0x10] sm:$0xf] }
  0x23   : > { %v255_v25 = vor.u32 %v254_v18, %v251_v17  ;;  %v265_v26 = vor.u32 %v264_v20, %v260_v19  ;;  %v823_v28 = vshll.u32 %v2449_v16, 16  ;;  %v806_v32 = vrot.slane %v804_v22, 4  ;;  %v2472_v41 = vld [vmem:[%s2426_s4 + $0x14] sm:$0x1]  ;;  %v2483_v53 = vld [vmem:[%s2426_s4 + $0x18] sm:$0xf] }
  0x24   : > { %v809_v33 = vrot.slane %v807_v23, 5  ;;  %v815_v34 = vrot.slane %v813_v24, 5  ;;  %v819_v38 = vrot.slane %v817_v27, 4  ;;  %v273_v42 = vshrl.u32 %v2457_v29, 16  ;;  %v2487_v58 = vld [vmem:[%s2426_s4 + $0x1c] sm:$0xf] }
  0x25   : > { %v256_v36 = vrot.slane %v255_v25, 4  ;;  %v266_v37 = vrot.slane %v265_v26, 4  ;;  %v825_v39 = vrot.slane %v823_v28, 5  ;;  %v276_v43 = vshll.u32 %v2457_v29, 16  ;;  %v2494_v62 = vld [vmem:[%s2426_s4 + $0x20] sm:$0x1] }
  0x26   : > { %v810_v40 = vor.u32 %v809_v33, %v806_v32  ;;  %v282_v44 = vshll.u32 %v2460_v30, 16  ;;  %v820_v47 = vor.u32 %v819_v38, %v815_v34  ;;  %v286_v48 = vshrl.u32 %v2460_v30, 16  ;;  %v2506_v17 = vld [vmem:[%s2426_s4 + $0x18] sm:$0xf]  ;;  %v2518_v26 = vld [vmem:[%s2426_s4 + $0x20] sm:$0x1] }
  0x27   : > { %v261_v45 = vsel %vm2464_vm4, %v256_v36, %v260_v19  ;;  %v271_v46 = vsel %vm2464_vm4, %v266_v37, %v270_v21  ;;  %v275_v51 = vrot.slane %v273_v42, 4  ;;  %v278_v52 = vrot.slane %v276_v43, 5  ;;  %v2511_v21 = vld [vmem:[%s2426_s4 + $0x1c] sm:$0xf]  ;;  %s2895_s24 = scalar_lea.sflag [#allocation3], %s210_s27  ;;  %s2298_s29 = smov [#allocation2]  }
  0x28   : > { %v1777_v49 = vcombine.low %v261_v45, %v271_v46  ;;  %v811_v50 = vrot.slane %v810_v40, 4  ;;  %v821_v54 = vrot.slane %v820_v47, 4  ;;  %v284_v55 = vrot.slane %v282_v44, 5  ;;  %v2531_v40 = vld [vmem:[%s2948_s1 + $0x4] sm:$0x3] }
  0x29   : > { %v288_v56 = vrot.slane %v286_v48, 4  ;;  %v292_v57 = vshll.u32 %v2472_v41, 16  ;;  %v1010_v60 = vrot.slane %v2449_v16, 5  ;;  %v279_v61 = vor.u32 %v278_v52, %v275_v51  ;;  %v2536_v46 = vld [vmem:[%s2426_s4 + $0x28] sm:$0xf] }
  0x2a   : > { %1952 = vmatprep.mubr.msk.bf16.mxu1 %vm358_vm3, %v1777_v49  ;;  %v816_v59 = vsel %vm2464_vm4, %v811_v50, %v815_v34  ;;  %v826_v0 = vsel %vm2464_vm4, %v821_v54, %v825_v39  ;;  %v828_v9 = vshrl.u32 %v2483_v53, 16  ;;  %v831_v12 = vshll.u32 %v2483_v53, 16  ;;  %v2524_v34 = vld [vmem:[%s2426_s4 + $0x24] sm:$0xf] }
  0x2b   : > { %v289_v2 = vor.u32 %v288_v56, %v284_v55  ;;  %v294_v4 = vrot.slane %v292_v57, 5  ;;  %v1830_v10 = vcombine.low %v816_v59, %v826_v0  ;;  %v280_v11 = vrot.slane %v279_v61, 4 }
  0x2c   : > { %v837_v14 = vshll.u32 %v2487_v58, 16  ;;  %v830_v18 = vrot.slane %v828_v9, 4  ;;  %v841_v19 = vshrl.u32 %v2487_v58, 16  ;;  %v847_v20 = vshll.u32 %v2494_v62, 16 }
  0x2d   : > { %v290_v5 = vrot.slane %v289_v2, 4  ;;  %1992 = vmatprep.mubr.msk.bf16.mxu0 %vm358_vm3, %v1830_v10  ;;  %v285_v22 = vsel %vm2464_vm4, %v280_v11, %v284_v55  ;;  %v833_v23 = vrot.slane %v831_v12, 5  ;;  %v1017_v25 = vrot.slane %v2494_v62, 5  ;;  %v2542_v55 = vld [vmem:[%s2426_s4 + $0x2c] sm:$0x1] }
  0x2e   : > { %v839_v24 = vrot.slane %v837_v14, 5  ;;  %v843_v28 = vrot.slane %v841_v19, 4  ;;  %v849_v32 = vrot.slane %v847_v20, 5  ;;  %v297_v33 = vshrl.u32 %v2506_v17, 16 }
  0x2f   : > { %v295_v27 = vsel %vm2464_vm4, %v290_v5, %v294_v4  ;;  %v834_v37 = vor.u32 %v833_v23, %v830_v18  ;;  %v300_v38 = vshll.u32 %v2506_v17, 16  ;;  %v306_v39 = vshll.u32 %v2511_v21, 16  ;;  %v1865_v23 = vld [vmem:[%s2948_s1 + $0xc] sm:$0x3] }
  0x30   : > { %v1778_v36 = vcombine.low %v285_v22, %v295_v27  ;;  %v844_v42 = vor.u32 %v843_v28, %v839_v24  ;;  %v299_v43 = vrot.slane %v297_v33, 4  ;;  %v310_v44 = vshrl.u32 %v2511_v21, 16  ;;  %v2570_v33 = vld [vmem:[%s2426_s4 + $0x24] sm:$0xf] }
  0x31   : > { %v316_v45 = vshll.u32 %v2518_v26, 16  ;;  %v835_v47 = vrot.slane %v834_v37, 4  ;;  %v302_v48 = vrot.slane %v300_v38, 5  ;;  %v308_v49 = vrot.slane %v306_v39, 5 }
  0x32   : > { %1953 = vmatmul.mubr.msk.bf16.vlgmr.msra.gmra.mrb[0].mxu1 %vm358_vm3, %v1778_v36  ;;  %v321_v50 = vshrl.u32 %v2524_v34, 16  ;;  %v845_v51 = vrot.slane %v844_v42, 4  ;;  %v312_v52 = vrot.slane %v310_v44, 4  ;;  %v324_v56 = vshll.u32 %v2524_v34, 16  ;;  %v2577_v42 = vld [vmem:[%s2426_s4 + $0x28] sm:$0xf] }
  0x33   : > { %1961 = vmatpush3.bf16.msra.mxu1 %v2469_v35  ;;  %v318_v54 = vrot.slane %v316_v45, 5  ;;  %v840_v57 = vsel %vm2464_vm4, %v835_v47, %v839_v24  ;;  %v303_v59 = vor.u32 %v302_v48, %v299_v43  ;;  %v330_v0 = vshll.u32 %v2536_v46, 16  ;;  %v2580_v43 = vld [vmem:[%s2426_s4 + $0x2c] sm:$0x1] }
  0x34   : > { %v323_v61 = vrot.slane %v321_v50, 4  ;;  %2108 = vmatprep.subr.msk.bf16.mxu1 %vm371_vm0, %v2531_v40  ;;  %v850_v35 = vsel %vm2464_vm4, %v845_v51, %v849_v32  ;;  %v313_v2 = vor.u32 %v312_v52, %v308_v49  ;;  %v326_v4 = vrot.slane %v324_v56, 5 }
  0x35   : > { %v334_v9 = vshrl.u32 %v2536_v46, 16  ;;  %v1831_v10 = vcombine.low %v840_v57, %v850_v35  ;;  %v304_v11 = vrot.slane %v303_v59, 4  ;;  %v332_v12 = vrot.slane %v330_v0, 5  ;;  %v2606_v0 = vld [vmem:[%s2426_s4 + $0x30] sm:$0xf] }
  0x36   : > { %v340_v14 = vshll.u32 %v2542_v55, 16  ;;  %v314_v5 = vrot.slane %v313_v2, 4  ;;  %v327_v18 = vor.u32 %v326_v4, %v323_v61  ;;  %v1838_v22 = vrot.slane %v2442_v13, 9 }
  0x37   : > { %v336_v19 = vrot.slane %v334_v9, 4  ;;  %1993 = vmatmul.mubr.msk.bf16.vlgmr.msra.gmra.mrb[0].mxu0 %vm358_vm3, %v1831_v10  ;;  %v309_v24 = vsel %vm2464_vm4, %v304_v11, %v308_v49  ;;  %v1007_v28 = vrot.slane %v2446_v15, 5  ;;  %v1839_v32 = vrot.slane %v2483_v53, 9  ;;  %v2615_v9 = vld [vmem:[%s2426_s4 + $0x38] sm:$0x1] }
  0x38   : > { %v342_v27 = vrot.slane %v340_v14, 5  ;;  %2001 = vmatpush3.bf16.msra.mxu0 %v2498_v63  ;;  %v319_v36 = vsel %vm2464_vm4, %v314_v5, %v318_v54  ;;  %v328_v37 = vrot.slane %v327_v18, 4  ;;  %v1014_v39 = vrot.slane %v2487_v58, 5  ;;  %v1820_v5 = vld [vmem:[%s2948_s1 + $0x6] sm:$0x3] }
  0x39   : > { %v337_v38 = vor.u32 %v336_v19, %v332_v12  ;;  %v1779_v44 = vcombine.low %v309_v24, %v319_v36  ;;  %v1008_v45 = vsel %vm2556_vm7, %v1838_v22, %v1007_v28  ;;  %v1009_v47 = vrot.slane %v1007_v28, 4  ;;  %2113 = vmatprep.subr.msk.bf16.mxu0 %vm371_vm0, %v1865_v23 }
  0x3a   : > { %v333_v63 = vsel %vm2464_vm4, %v328_v37, %v332_v12  ;;  %v1016_v49 = vrot.slane %v1014_v39, 4  ;;  %v1785_v50 = vcombine.low %v2429_v6, %v2432_v7  ;;  %v1840_v52 = vrot.slane %v2570_v33, 9  ;;  %v1874_v12 = vld [vmem:[%s2948_s1 + $0xe] sm:$0x3]  ;;  %v2644_v37 = vld [vmem:[%s2426_s4 + $0x18] sm:$0xf] }
  0x3b   : > { %v338_v48 = vrot.slane %v337_v38, 4  ;;  %1956 = vmatprep.mubr.msk.bf16.mxu1 %vm358_vm3, %v1779_v44  ;;  %v1011_v51 = vsel %vm2556_vm7, %v1009_v47, %v1010_v60  ;;  %v1021_v54 = vrot.slane %v2577_v42, 5  ;;  %v1024_v56 = vrot.slane %v2580_v43, 5  ;;  %v2609_v60 = vld [vmem:[%s2426_s4 + $0x34] sm:$0xf] }
  0x3c   : > { %v1843_v59 = vcombine.low %v1008_v45, %v1011_v51  ;;  %v1015_v61 = vsel %vm2556_vm7, %v1839_v32, %v1014_v39  ;;  %v1018_v16 = vsel %vm2556_vm7, %v1016_v49, %v1017_v25  ;;  %v1841_v25 = vrot.slane %v2606_v0, 9  ;;  %v2647_v38 = vld [vmem:[%s2426_s4 + $0x1c] sm:$0xf]  ;;  %v2661_v45 = vld [vmem:[%s2426_s4 + $0x24] sm:$0xf] }
  0x3d   : > { %v343_v57 = vsel %vm2464_vm4, %v338_v48, %v342_v27  ;;  %v1022_v2 = vsel %vm2556_vm7, %v1840_v52, %v1021_v54  ;;  %v1023_v4 = vrot.slane %v1021_v54, 4  ;;  %v1844_v10 = vcombine.low %v1015_v61, %v1018_v16  ;;  %v2664_v47 = vld [vmem:[%s2426_s4 + $0x28] sm:$0xf] }
  0x3e   : > { %v1780_v35 = vcombine.low %v333_v63, %v343_v57  ;;  %2002 = vmatprep.mubr.msk.bf16.mxu0 %vm358_vm3, %v1843_v59  ;;  %v1028_v11 = vrot.slane %v2609_v60, 5  ;;  %v556_v18 = vrot.slane %v2460_v30, 5  ;;  %v1186_v19 = vsel %vm371_vm0, %v1865_v23, 0  ;;  %v2679_v57 = vld [vmem:[%s2426_s4 + $0x34] sm:$0xf] }
  0x3f   : > { %v1025_v62 = vsel %vm2556_vm7, %v1023_v4, %v1024_v56  ;;  %v1031_v24 = vrot.slane %v2615_v9, 5  ;;  %v602_v27 = vsel %vm371_vm0, %v2531_v40, 0  ;;  %v2635_v28 = vsel %vm371_vm0, %v1874_v12, 0 }
  0x40   : > { %1957 = vmatmul.mubr.msk.bf16.gmra.mrb[4].mxu1 %vm358_vm3, %v1780_v35  ;;  %v1845_v14 = vcombine.low %v1022_v2, %v1025_v62  ;;  %v1030_v22 = vrot.slane %v1028_v11, 4  ;;  %v559_v32 = vrot.slane %v2472_v41, 5  ;;  %v1786_v36 = vcombine.low %v2457_v29, %v2460_v30 }
  0x41   : > { %1962 = vmatprep.mubr.msk.bf16.mxu1 %vm358_vm3, %v1785_v50  ;;  %v1029_v23 = vsel %vm2556_vm7, %v1841_v25, %v1028_v11  ;;  %v2650_v40 = vsel %vm371_vm0, %v1820_v5, 0  ;;  %v552_v39 = vrot.slane %v2435_v8, 5  ;;  %v1787_v41 = vcombine.low %v2506_v17, %v2511_v21  ;;  %v2671_v50 = vld [vmem:[%s2426_s4 + $0x30] sm:$0xf] }
  0x42   : > { %v1032_v30 = vsel %vm2556_vm7, %v1030_v22, %v1031_v24  ;;  %v1788_v44 = vcombine.low %v2524_v34, %v2536_v46  ;;  %v1793_v8 = vrot.slane %v2429_v6, 9  ;;  %v549_v63 = vrot.slane %v2432_v7, 5 }
  0x43   : > { %2003 = vmatmul.mubr.msk.bf16.vlgmr.msra.gmra.mrb[0].mxu0 %vm358_vm3, %v1844_v10  ;;  %v1794_v48 = vrot.slane %v2457_v29, 9  ;;  %v558_v49 = vrot.slane %v556_v18, 4  ;;  %v1866_v51 = vcombine.low %v2644_v37, %v2647_v38  ;;  %v1262_v52 = vshrl.u32 %v2644_v37, 16 }
  0x44   : > { %2011 = vmatpush3.bf16.msra.mxu0 %v1186_v19  ;;  %2006 = vmatprep.mubr.msk.bf16.mxu0 %vm358_vm3, %v1845_v14  ;;  %v1265_v54 = vshll.u32 %v2644_v37, 16  ;;  %v1275_v56 = vshrl.u32 %v2647_v38, 16  ;;  %v1846_v6 = vcombine.low %v1029_v23, %v1032_v30  ;;  %v551_v7 = vrot.slane %v549_v63, 4  ;;  %v2710_v19 = vld [vmem:[%s2426_s4 + $0x20] sm:$0x1] }
  0x45   : > { %2114 = vmatprep.subr.msk.bf16.mxu0 %vm371_vm0, %v1874_v12  ;;  %v2684_v29 = vsel %vm2556_vm7, %v1794_v48, %v556_v18  ;;  %v2688_v59 = vsel %vm2556_vm7, %v558_v49, %v559_v32  ;;  %v1867_v61 = vcombine.low %v2661_v45, %v2664_v47  ;;  %v1286_v16 = vshrl.u32 %v2661_v45, 16 }
  0x46   : > { %v1289_v35 = vshll.u32 %v2661_v45, 16  ;;  %v1299_v2 = vshrl.u32 %v2664_v47, 16  ;;  %v550_v4 = vsel %vm2556_vm7, %v1793_v8, %v549_v63  ;;  %v553_v10 = vsel %vm2556_vm7, %v551_v7, %v552_v39 }
  0x47   : > { %v1868_v62 = vcombine.low %v2671_v50, %v2679_v57  ;;  %v563_v25 = vrot.slane %v2511_v21, 5  ;;  %v1799_v11 = vcombine.low %v2684_v29, %v2688_v59  ;;  %v1310_v12 = vshrl.u32 %v2671_v50, 16 }
  0x48   : > { %1963 = vmatmul.mubr.msk.bf16.vlgmr.msra.gmra.mrb[0].mxu1 %vm358_vm3, %v1786_v36  ;;  %v1313_v14 = vshll.u32 %v2671_v50, 16  ;;  %v1323_v18 = vshrl.u32 %v2679_v57, 16  ;;  %v1795_v22 = vrot.slane %v2506_v17, 9  ;;  %v566_v21 = vrot.slane %v2518_v26, 5  ;;  %v2720_v36 = vld [vmem:[%s2426_s4 + $0x40] sm:$0xf] }
  0x49   : > { %1971 = vmatpush3.bf16.msra.mxu1 %v602_v27  ;;  %1966 = vmatprep.mubr.msk.bf16.mxu1 %vm358_vm3, %v1787_v41  ;;  %v565_v24 = vrot.slane %v563_v25, 4  ;;  %v1264_v27 = vrot.slane %v1262_v52, 4  ;;  %v1798_v32 = vcombine.low %v550_v4, %v553_v10  ;;  %v1267_v39 = vrot.slane %v1265_v54, 5  ;;  %v2727_v17 = vld [vmem:[%s2426_s4 + $0x2c] sm:$0x1] }
  0x4a   : > { %2109 = vmatprep.subr.msk.bf16.mxu1 %vm371_vm0, %v1820_v5  ;;  %v2714_v5 = vld [vmem:[%s2426_s4 + $0x3c] sm:$0xf]  ;;  %v1271_v30 = vshll.u32 %v2647_v38, 16  ;;  %v1277_v8 = vrot.slane %v1275_v56, 4  ;;  %v1281_v63 = vshll.u32 %v2710_v19, 16  ;;  %v1288_v48 = vrot.slane %v1286_v16, 4 }
  0x4b   : > { %2007 = vmatmul.mubr.msk.bf16.gmra.mrb[4].mxu0 %vm358_vm3, %v1846_v6  ;;  %v1334_v23 = vshrl.u32 %v2714_v5, 16  ;;  %v1337_v41 = vshll.u32 %v2714_v5, 16  ;;  %v1347_v26 = vshrl.u32 %v2720_v36, 16  ;;  %v570_v49 = vrot.slane %v2536_v46, 5 }
  0x4c   : > { %2012 = vmatprep.mubr.msk.bf16.mxu0 %vm358_vm3, %v1866_v51  ;;  %v1268_v51 = vor.u32 %v1267_v39, %v1264_v27  ;;  %v1273_v52 = vrot.slane %v1271_v30, 5  ;;  %v564_v54 = vsel %vm2556_vm7, %v1795_v22, %v563_v25  ;;  %v567_v6 = vsel %vm2556_vm7, %v565_v24, %v566_v21  ;;  %v1887_v25 = vld [vmem:[%s2948_s1 + $0x10] sm:$0x3]  ;;  %v2745_v30 = vld [vmem:[%s2426_s4 + $0x38] sm:$0x1] }
  0x4d   : > { %v1291_v56 = vrot.slane %v1289_v35, 5  ;;  %v1295_v7 = vshll.u32 %v2664_v47, 16  ;;  %v1301_v10 = vrot.slane %v1299_v2, 4  ;;  %v1305_v46 = vshll.u32 %v2727_v17, 16 }
  0x4e   : > { %v1269_v16 = vrot.slane %v1268_v51, 4  ;;  %v1278_v4 = vor.u32 %v1277_v8, %v1273_v52  ;;  %v1796_v27 = vrot.slane %v2524_v34, 9  ;;  %v572_v21 = vrot.slane %v570_v49, 4 }
  0x4f   : > { %v1292_v22 = vor.u32 %v1291_v56, %v1288_v48  ;;  %v1297_v24 = vrot.slane %v1295_v7, 5  ;;  %v573_v35 = vrot.slane %v2542_v55, 5  ;;  %v1800_v2 = vcombine.low %v564_v54, %v567_v6 }
  0x50   : > { %1967 = vmatmul.mubr.msk.bf16.gmra.mrb[4].mxu1 %vm358_vm3, %v1788_v44  ;;  %v1283_v44 = vrot.slane %v1281_v63, 5  ;;  %v1279_v39 = vrot.slane %v1278_v4, 4  ;;  %v1315_v34 = vrot.slane %v1313_v14, 5  ;;  %v1319_v63 = vshll.u32 %v2679_v57, 16 }
  0x51   : > { %1972 = vmatprep.mubr.msk.bf16.mxu1 %vm358_vm3, %v1798_v32  ;;  %v1312_v32 = vrot.slane %v1310_v12, 4  ;;  %v1302_v8 = vor.u32 %v1301_v10, %v1297_v24  ;;  %v1274_v48 = vsel %vm2464_vm4, %v1269_v16, %v1273_v52  ;;  %v1293_v55 = vrot.slane %v1292_v22, 4 }
  0x52   : > { %v1307_v51 = vrot.slane %v1305_v46, 5  ;;  %v1325_v56 = vrot.slane %v1323_v18, 4  ;;  %v1284_v12 = vsel %vm2464_vm4, %v1279_v39, %v1283_v44  ;;  %v1329_v14 = vshll.u32 %v2745_v30, 16 }
  0x53   : > { %2013 = vmatmul.mubr.msk.bf16.vlgmr.msra.gmra.mrb[0].mxu0 %vm358_vm3, %v1867_v61  ;;  %v1316_v61 = vor.u32 %v1315_v34, %v1312_v32  ;;  %v1336_v54 = vrot.slane %v1334_v23, 4  ;;  %v1303_v6 = vrot.slane %v1302_v8, 4  ;;  %v1321_v7 = vrot.slane %v1319_v63, 5 }
  0x54   : > { %2021 = vmatpush3.bf16.msra.mxu0 %v2635_v28  ;;  %2016 = vmatprep.mubr.msk.bf16.mxu0 %vm358_vm3, %v1868_v62  ;;  %v2758_v28 = vld [vmem:[%s2426_s4 + $0x44] sm:$0x1]  ;;  %v1339_v62 = vrot.slane %v1337_v41, 5  ;;  %v1343_v4 = vshll.u32 %v2720_v36, 16  ;;  %v1869_v18 = vcombine.low %v2714_v5, %v2720_v36  ;;  %v571_v52 = vsel %vm2556_vm7, %v1796_v27, %v570_v49  ;;  %s1771_s4 = sshll.u32 %s210_s27, 6 }
  0x55   : > { %2115 = vmatprep.subr.msk.bf16.mxu0 %vm371_vm0, %v1887_v25  ;;  %v1349_v16 = vrot.slane %v1347_v26, 4  ;;  %v574_v23 = vsel %vm2556_vm7, %v572_v21, %v573_v35  ;;  %v1875_v41 = vcombine.low %v1274_v48, %v1284_v12  ;;  %v1326_v10 = vor.u32 %v1325_v56, %v1321_v7  ;;  %s2875_s9 = scalar_lea.vmem [#allocation2], %s1771_s4  ;;  %s2206_s4 = sshll.u32 %s2298_s29, 4  ;;  %s2207_s4 = int_to_ptr.vmem [resolvable:$false] %s2206_s4 }
  0x56   : > { %v2773_v46 = vrot.slane %v1343_v4, 5  ;;  %v1317_v29 = vrot.slane %v1316_v61, 4  ;;  %v1331_v59 = vrot.slane %v1329_v14, 5  ;;  %v1298_v26 = vsel %vm2464_vm4, %v1293_v55, %v1297_v24  ;;  %s1644_s16 = sshll.u32 %s2875_s9, 4  ;;  %s2208_s5 = scalar_lea.vmem %s2207_s4, 2048  ;;  %s2888_s16 = int_to_ptr.vmem [resolvable:$true] %s1644_s16 }
  0x57   : > { %v1327_v49 = vrot.slane %v1326_v10, 4  ;;  %v1340_v27 = vor.u32 %v1339_v62, %v1336_v54  ;;  %v1801_v44 = vcombine.low %v571_v52, %v574_v23  ;;  %v1821_v21 = vcombine.low %v2442_v13, %v2446_v15  ;;  %s2202_s28 = scalar_lea.vmem %s2888_s16, 1024  ;;  %p2209_p2 = scmp.lt.s32.totalorder %s2888_s16, %s2207_s4 }
  0x58   : > { %1973 = vmatmul.mubr.msk.bf16.vlgmr.msra.gmra.mrb[0].mxu1 %vm358_vm3, %v1799_v11  ;;  %v1353_v11 = vshll.u32 %v2758_v28, 16  ;;  %v1350_v22 = vor.u32 %v1349_v16, %v2773_v46  ;;  %v1465_v35 = vrot.slane %v2647_v38, 5  ;;  %v1322_v39 = vsel %vm2464_vm4, %v1317_v29, %v1321_v7  ;;  %p2203_p13 = scmp.ne.s32.totalorder %s2888_s16, %s2202_s28  ;;  %p2210_p4 = scmp.lt.s32.totalorder %s2208_s5, %s2202_s28 }
  0x59   : > { %1981 = vmatpush3.bf16.msra.mxu1 %v2650_v40  ;;  %1976 = vmatprep.mubr.msk.bf16.mxu1 %vm358_vm3, %v1800_v2  ;;  %v1308_v40 = vsel %vm2464_vm4, %v1303_v6, %v1307_v51  ;;  %v1332_v32 = vsel %vm2464_vm4, %v1327_v49, %v1331_v59  ;;  %v1341_v8 = vrot.slane %v1340_v27, 4  ;;  %v1883_v34 = vrot.slane %v2644_v37, 9 }
  0x5a   : > { %2111 = vmatprep.subr.msk.bf16.mxu1 %vm371_vm0, %v2398_v1  ;;  %v1518_v1 = vsel %vm371_vm0, %v1887_v25, 0  ;;  %v1876_v24 = vcombine.low %v1298_v26, %v1308_v40  ;;  %v1355_v2 = vrot.slane %v1353_v11, 5  ;;  %v852_v63 = vshrl.u32 %v2570_v33, 16  ;;  %p2204_p0 = pnand %p2203_p13, %p2372_p3  ;;  %p2211_p5 = por %p2210_p4, %p2209_p2 }
  0x5b   : > { %2017 = vmatmul.mubr.msk.bf16.gmra.mrb[4].mxu0 %vm358_vm3, %v1869_v18  ;;  %v855_v25 = vshll.u32 %v2570_v33, 16  ;;  %v1351_v13 = vrot.slane %v1350_v22, 4  ;;  %v1468_v15 = vrot.slane %v2710_v19, 5  ;;  %v861_v38 = vshll.u32 %v2577_v42, 16 }
  0x5c   : > { %2022 = vmatprep.mubr.msk.bf16.mxu0 %vm358_vm3, %v1875_v41  ;;  %v865_v48 = vshrl.u32 %v2577_v42, 16  ;;  %v1877_v55 = vcombine.low %v1322_v39, %v1332_v32  ;;  %v1467_v51 = vrot.slane %v1465_v35, 4  ;;  %v854_v56 = vrot.slane %v852_v63, 4  ;;  %p2205_p1 = pneg %p2204_p0 }
  0x5d   : > { %v857_v12 = vrot.slane %v855_v25, 5  ;;  %v876_v37 = vshrl.u32 %v2606_v0, 16  ;;  %v863_v61 = vrot.slane %v861_v38, 5  ;;  %v871_v54 = vshll.u32 %v2580_v43, 16 }
  0x5e   : > { %v867_v14 = vrot.slane %v865_v48, 4  ;;  %v879_v6 = vshll.u32 %v2606_v0, 16  ;;  %v885_v19 = vshll.u32 %v2609_v60, 16  ;;  %v889_v7 = vshrl.u32 %v2609_v60, 16  ;;  %p2212_p6 = pnand %p2211_p5, %p2205_p1 }
  0x5f   : > { %v858_v62 = vor.u32 %v857_v12, %v854_v56  ;;  %v1822_v4 = vcombine.low %v2483_v53, %v2487_v58  ;;  %v1346_v18 = vsel %vm2464_vm4, %v1341_v8, %v2773_v46  ;;  %v1823_v52 = vcombine.low %v2570_v33, %v2577_v42 }
  0x60   : > { %1977 = vmatmul.mubr.msk.bf16.gmra.mrb[4].mxu1 %vm358_vm3, %v1801_v44  ;;  %v868_v43 = vor.u32 %v867_v14, %v863_v61  ;;  %v1356_v16 = vsel %vm2464_vm4, %v1351_v13, %v1355_v2  ;;  %v1466_v23 = vsel %vm2556_vm7, %v1883_v34, %v1465_v35  ;;  %v1469_v53 = vsel %vm2556_vm7, %v1467_v51, %v1468_v15  ;;  %v1897_v14 = vld [vmem:[%s2949_s2 + $0x1] ss:$0 sm:$0xff] }
  0x61   : > { %1982 = vmatprep.mubr.msk.bf16.mxu1 %vm358_vm3, %v1821_v21  ;;  %v1472_v58 = vrot.slane %v2664_v47, 5  ;;  %v859_v41 = vrot.slane %v858_v62, 4  ;;  %v873_v46 = vrot.slane %v871_v54, 5  ;;  %v1479_v33 = vrot.slane %v2679_v57, 5 }
  0x62   : > { %v869_v10 = vrot.slane %v868_v43, 4  ;;  %v878_v42 = vrot.slane %v876_v37, 4  ;;  %v881_v29 = vrot.slane %v879_v6, 5  ;;  %v887_v59 = vrot.slane %v885_v19, 5 }
  0x63   : > { %2023 = vmatmul.mubr.msk.bf16.vlgmr.msra.gmra.mrb[0].mxu0 %vm358_vm3, %v1876_v24  ;;  %v891_v11 = vrot.slane %v889_v7, 4  ;;  %v1878_v26 = vcombine.low %v1346_v18, %v1356_v16  ;;  %v1884_v40 = vrot.slane %v2661_v45, 9  ;;  %v1888_v49 = vcombine.low %v1466_v23, %v1469_v53 }
  0x64   : > { %2031 = vmatpush3.bf16.msra.mxu0 %v1518_v1  ;;  %2026 = vmatprep.mubr.msk.bf16.mxu0 %vm358_vm3, %v1877_v55  ;;  %v1474_v47 = vrot.slane %v1472_v58, 4  ;;  %v1475_v27 = vrot.slane %v2727_v17, 5  ;;  %v1885_v44 = vrot.slane %v2671_v50, 9  ;;  %v864_v57 = vsel %vm2464_vm4, %v859_v41, %v863_v61 }
  0x65   : > { %v874_v22 = vsel %vm2464_vm4, %v869_v10, %v873_v46  ;;  %v1481_v1 = vrot.slane %v1479_v33, 4  ;;  %v1482_v21 = vrot.slane %v2745_v30, 5  ;;  %v895_v45 = vshll.u32 %v2615_v9, 16 }
  0x66   : > { %v1473_v17 = vsel %vm2556_vm7, %v1884_v40, %v1472_v58  ;;  %v882_v50 = vor.u32 %v881_v29, %v878_v42  ;;  %v1476_v35 = vsel %vm2556_vm7, %v1474_v47, %v1475_v27  ;;  %v1832_v24 = vcombine.low %v864_v57, %v874_v22 }
  0x67   : > { %v892_v39 = vor.u32 %v891_v11, %v887_v59  ;;  %v1486_v30 = vrot.slane %v2720_v36, 5  ;;  %v1480_v9 = vsel %vm2556_vm7, %v1885_v44, %v1479_v33  ;;  %v1483_v32 = vsel %vm2556_vm7, %v1481_v1, %v1482_v21 }
  0x68   : > { %1983 = vmatmul.mubr.msk.bf16.vlgmr.msra.gmra.mrb[0].mxu1 %vm358_vm3, %v1822_v4  ;;  %v883_v2 = vrot.slane %v882_v50, 4  ;;  %v1886_v8 = vrot.slane %v2714_v5, 9  ;;  %v1890_v34 = vcombine.low %v1480_v9, %v1483_v32  ;;  %v1489_v36 = vrot.slane %v2758_v28, 5 }
  0x69   : > { %2041 = vmatpush3.bf16.msra.mxu1 %v2407_v3  ;;  %1986 = vmatprep.mubr.msk.bf16.mxu1 %vm358_vm3, %v1823_v52  ;;  %v1824_v3 = vcombine.low %v2606_v0, %v2609_v60  ;;  %v897_v0 = vrot.slane %v895_v45, 5  ;;  %v1889_v60 = vcombine.low %v1473_v17, %v1476_v35  ;;  %v893_v63 = vrot.slane %v892_v39, 4 }
  0x6a   : > { %v1488_v25 = vrot.slane %v1486_v30, 4  ;;  %v888_v13 = vsel %vm2464_vm4, %v883_v2, %v887_v59  ;;  %v1487_v5 = vsel %vm2556_vm7, %v1886_v8, %v1486_v30 }
  0x6b   : > { %2027 = vmatmul.mubr.msk.bf16.gmra.mrb[4].mxu0 %vm358_vm3, %v1878_v26  ;;  %v898_v15 = vsel %vm2464_vm4, %v893_v63, %v897_v0 }
  0x6c   : > { %2032 = vmatprep.mubr.msk.bf16.mxu0 %vm358_vm3, %v1888_v49  ;;  %v1490_v38 = vsel %vm2556_vm7, %v1488_v25, %v1489_v36  ;;  %v1833_v48 = vcombine.low %v888_v13, %v898_v15 }
  0x6d   : > { %v1891_v55 = vcombine.low %v1487_v5, %v1490_v38 }
  0x70   : > { %1987 = vmatmul.mubr.msk.bf16.gmra.mrb[4].mxu1 %vm358_vm3, %v1824_v3 }
  0x71   : > { %1996 = vmatprep.mubr.msk.bf16.mxu1 %vm358_vm3, %v1832_v24 }
  0x73   : > { %2033 = vmatmul.mubr.msk.bf16.vlgmr.msra.gmra.mrb[0].mxu0 %vm358_vm3, %v1889_v60 }
  0x74   : > { %2036 = vmatprep.mubr.msk.bf16.mxu0 %vm358_vm3, %v1890_v34 }
  0x7b   : > { %2037 = vmatmul.mubr.msk.bf16.gmra.mrb[4].mxu0 %vm358_vm3, %v1891_v55 }
  0x7c   : > { %1997 = vmatmul.mubr.msk.bf16.vlgmr.msra.gmra.mrb[4].mxu1 %vm358_vm3, %v1833_v48 }
 0x13b   : > { %v1984_v28 = vpop.f32.mrb[0].mxu1 }
 0x13c   : > { %v764_v51 = vpop.f32.mrb[1].mxu1 }
 0x13d   : > { %v1985_v56 = vpop.f32.mrb[2].mxu1 }
 0x13e   : > { %v767_v12 = vpop.f32.mrb[3].mxu1 }
 0x146   : > { %v2034_v37 = vpop.f32.mrb[0].mxu0 }
 0x147   : > { %v2042_v20 = vadd.f32 %v2034_v37, %v1984_v28  ;;  %v1554_v61 = vpop.f32.mrb[1].mxu0 }
 0x148   : > { %v2043_v54 = vadd.f32 %v1554_v61, %v764_v51  ;;  %v2035_v6 = vpop.f32.mrb[2].mxu0 }
 0x149   : > { %v1600_v19 = vmul.f32 %v2042_v20, %v1896_v31  ;;  %v2044_v7 = vadd.f32 %v2035_v6, %v1985_v56  ;;  %v1557_v62 = vpop.f32.mrb[3].mxu0 }
 0x14a   : > { %v1598_v4 = vmul.f32 %v2043_v54, %v1896_v31  ;;  %v2045_v18 = vadd.f32 %v1557_v62, %v767_v12 }
 0x14b   : > { %v1613_v52 = vadd.f32 %v1897_v14, %v1600_v19  ;;  %v1601_v43 = vmul.f32 %v2044_v7, %v1896_v31 }
 0x14c   : > { %v1611_v16 = vadd.f32 %v1897_v14, %v1598_v4  ;;  %v1599_v23 = vmul.f32 %v2045_v18, %v1896_v31 }
 0x14d   : > { %1621 = vst [vmem:[%s2875_s9 + $0x10] sm:$0xff] %v1613_v52  ;;  %v1614_v53 = vadd.f32 %v1897_v14, %v1601_v43 }
 0x14e   : > { %1619 = vst [vmem:[%s2875_s9] sm:$0xff] %v1611_v16  ;;  %v1612_v58 = vadd.f32 %v1897_v14, %v1599_v23  ;;  %v2038_v10 = vpop.f32.mrb[4].mxu0 }
 0x14f   : > { %v1998_v41 = vpop.f32.mrb[4].mxu1  ;;  %1622 = vst [vmem:[%s2875_s9 + $0x18] sm:$0xff] %v1614_v53  ;;  %v1570_v42 = vpop.f32.mrb[5].mxu0 }
 0x150   : > { %v2046_v46 = vadd.f32 %v2038_v10, %v1998_v41  ;;  %v978_v33 = vpop.f32.mrb[5].mxu1  ;;  %1620 = vst [vmem:[%s2875_s9 + $0x8] sm:$0xff] %v1612_v58  ;;  %v2039_v11 = vpop.f32.mrb[6].mxu0 }
 0x151   : > { %v2047_v29 = vadd.f32 %v1570_v42, %v978_v33  ;;  %v1999_v59 = vpop.f32.mrb[6].mxu1  ;;  %v1573_v47 = vpop.f32.mrb[7].mxu0 }
 0x152   : > { %v1604_v26 = vmul.f32 %v2046_v46, %v1896_v31  ;;  %v2048_v40 = vadd.f32 %v2039_v11, %v1999_v59  ;;  %v981_v49 = vpop.f32.mrb[7].mxu1 }
 0x153   : > { %v1602_v27 = vmul.f32 %v2047_v29, %v1896_v31  ;;  %v2049_v44 = vadd.f32 %v1573_v47, %v981_v49 }
 0x154   : > { %v1617_v57 = vadd.f32 %v1897_v14, %v1604_v26  ;;  %v1605_v22 = vmul.f32 %v2048_v40, %v1896_v31 }
 0x155   : > { %v1615_v1 = vadd.f32 %v1897_v14, %v1602_v27  ;;  %v1603_v21 = vmul.f32 %v2049_v44, %v1896_v31 }
 0x156   : > { %1625 = vst [vmem:[%s2875_s9 + $0x30] sm:$0xff] %v1617_v57  ;;  %v1618_v45 = vadd.f32 %v1897_v14, %v1605_v22 }
 0x157   : > { %1623 = vst [vmem:[%s2875_s9 + $0x20] sm:$0xff] %v1615_v1  ;;  %v1616_v3 = vadd.f32 %v1897_v14, %v1603_v21 }
 0x158   : > { %1626 = vst [vmem:[%s2875_s9 + $0x38] sm:$0xff] %v1618_v45 }
 0x159   : > { %1624 = vst [vmem:[%s2875_s9 + $0x28] sm:$0xff] %v1616_v3 }
 0x15a   : > { %2215 = shalt.err (!%p2212_p6)
}
 0x15b   : > { %s2216_s27 = scalar_lea.hbm %s2886_s21, 1024  ;;  %s2220_s8 = scalar_lea.hbm %s2950_s3, 8192 }
 0x15c   : > { %p2217_p7 = scmp.ne.s32.totalorder %s2886_s21, %s2216_s27  ;;  %p2221_p11 = scmp.lt.u32.totalorder %s2886_s21, %s2950_s3 }
 0x15d   : > { %p2222_p12 = scmp.lt.u32.totalorder %s2220_s8, %s2216_s27  ;;  %p2224_p0 = scmp.lt.u32.totalorder %s2216_s27, %s2886_s21 }
 0x15e   : > { %p2218_p9 = pnand %p2217_p7, %p2372_p3 }
 0x15f   : > { %p2223_p13 = por %p2222_p12, %p2221_p11 }
 0x160   : > { %p2219_p10 = pneg %p2218_p9 }
 0x161   : > { %p2225_p1 = por %p2224_p0, %p2223_p13 }
 0x163   : > { %p2226_p2 = pnand %p2225_p1, %p2219_p10 }
 0x165   : > { %2229 = shalt.err (!%p2226_p2)
}
 0x166   : > { %s2299_s15 = smov 128   ;;  %s2300_s11 = smov 8  }
 0x167   : > { %2117 = dma.vmem_to_hbm [thread:$0]  (%p2372_p3), %s2888_s16, 1024, %s2886_s21, %s2895_s24, %s2299_s15, %s2299_s15, %s2300_s11  }
 0x168 PF: > { %p2123_p4 = scmp.ge.s32.totalorder %s2296_s19, 2  ;;  %s1659_s20 = sand.u32 1, %s2268_s12  }
 0x169   : > { %s1660_s28 = scalar_lea.sflag [#allocation3], %s1659_s20 }
 0x16a   : > { %p2120_p5 = pnand %p2123_p4, %p2381_p8 }
 0x16c   : > { %2263 = dma.done.wait (!%p2120_p5), %s1660_s28, 1024  }
 0x16d   : > { %2265 = vsyncadd (!%p2120_p5), %s1660_s28, 4294966272  ;;  %s16_s19 = sadd.s32 1, %s2296_s19   ;;  %s2957_s12 = smov %s2272_s13 }
 0x16e   : > { %p13_p6 = scmp.ge.s32.totalorder %s16_s19, 10   ;;  %s2958_s13 = smov %s2276_s14 }
 0x16f   : > { %s2959_s14 = smov %s2390_s30  ;;  %s2960_s15 = smov %s2288_s17 }
 0x170   : > { %s2961_s16 = smov %s2292_s18  ;;  %s2962_s17 = smov %s2965_s22 }
 0x171   : > { %s2963_s18 = smov %s2969_s23  ;;  %15 = sbr.rel (!%p13_p6) target bundleno = 5 (0x5), region = 84 }
 0x178   :  { %1665 = vsyncpa [#allocation3], 1 }
 0x179   :  { %1667 = vsyncpa [#allocation3 + $0x1], 1 }

// kernel: tpu_custom_call.1
= control target key start
LH: loop header
LB: loop body
LE: loop exit
PB: predicated region body
PF: predicated region fallthrough
CT: control target
= control target key end

     0   :  { %8 = vsyncpa [#allocation3], 0  ;;  %s2947_s0 = inlined_call_operand.vmem [shape: bf16[2,18,18,4], index: 0, kind: input, shape index: {}]   ;;  %s2948_s1 = inlined_call_operand.vmem [shape: bf16[3,3,4,128], index: 1, kind: input, shape index: {}]   ;;  %s2949_s2 = inlined_call_operand.vmem [shape: f32[2,128], index: 2, kind: input, shape index: {}]   ;;  %s2950_s3 = inlined_call_operand.hbm [shape: f32[2,256,128], index: 3, kind: output, shape index: {}]  }
   0x1   :  { %10 = vsyncpa [#allocation3 + $0x1], 0  ;;  %s2321_s12 = smov 0   ;;  %s2323_s13 = smov 0  }
   0x2   :  { %s2325_s14 = smov 0   ;;  %s2327_s15 = smov 0  }
   0x3   :  { %s2329_s16 = smov 0   ;;  %s2331_s17 = smov 0  }
   0x4   :  { %s2333_s18 = smov 0   ;;  %s2335_s19 = smov 0  }
   0x5 LB: > { %s1764_s20 = sadd.s32 4294967295, %s2296_s19   ;;  %s1765_s21 = sadd.s32 4294967294, %s2296_s19   ;;  %s2296_s19 = sphi %s2335_s19, %s16_s19   ;;  %s2292_s18 = sphi %s2333_s18, %s2963_s18   ;;  %s2288_s17 = sphi %s2331_s17, %s2962_s17   ;;  %s2284_s16 = sphi %s2329_s16, %s2961_s16   ;;  %s2280_s15 = sphi %s2327_s15, %s2960_s15   ;;  %s2276_s14 = sphi %s2325_s14, %s2959_s14   ;;  %s2272_s13 = sphi %s2323_s13, %s2958_s13   ;;  %s2268_s12 = sphi %s2321_s12, %s2957_s12  }
   0x6   : > { %s28_s22 = sadd.s32 1, %s2288_s17  ;;  %s35_s23 = sadd.s32 1, %s2292_s18 }
   0x7   : > { %p29_p0 = scmp.ge.s32.totalorder %s28_s22, 4  ;;  %p134_p1 = scmp.ne.s32.totalorder %s2276_s14, %s2272_s13 }
   0x8   : > { %p135_p2 = scmp.eq.s32.totalorder %s1764_s20, 7  ;;  %p140_p5 = scmp.ne.s32.totalorder %s2272_s13, %s2268_s12 }
   0x9   : > { %s2965_s22 = smov (%p29_p0, %s28_s22), 0  ;;  %s2967_s23 = smov (!%p29_p0, %s35_s23), %s2292_s18 }
   0xa   : > { %s118_s24 = ssub.s32 %s2288_s17, %s2965_s22  ;;  %p2372_p3 = por %p135_p2, %p134_p1 }
   0xb   : > { %p37_p4 = scmp.ge.s32.totalorder %s2967_s23, 2  ;;  %p141_p6 = scmp.eq.s32.totalorder %s1765_s21, 7 }
   0xc   : > { %p1770_p7 = scmp.ge.s32.totalorder %s2296_s19, 1  ;;  %p181_p9 = scmp.lt.s32.totalorder %s2296_s19, 9 }
   0xd   : > { %s2969_s23 = smov (%p37_p4, %s2967_s23), 0  ;;  %p2381_p8 = por %p141_p6, %p140_p5 }
   0xe   : > { %s117_s27 = ssub.s32 %s2292_s18, %s2969_s23  ;;  %s124_s28 = sadd.s32 1, %s2276_s14 }
   0xf   : > { %s119_s29 = sor.u32 %s118_s24, %s117_s27  ;;  %p182_p10 = pnand %p1770_p7, %p181_p9 }
  0x10   : > { %p122_p11 = scmp.eq.s32.totalorder %s119_s29, 0  ;;  %v1776_v0 = vld [vmem:[%s2948_s1 + $0x2] sm:$0x3] (!%p182_p10)  ;;  %vm371_vm0 = vcmask (!%p182_p10), 1041408   ;;  %v2398_v1 = vld [vmem:[%s2948_s1 + $0x8] sm:$0x3] (!%p182_p10) }
  0x11   : > { %185 = sbr.rel (%p182_p10) target bundleno = 360 (0x168), region = 32  ;;  %p213_p12 = scmp.lt.s32.totalorder (!%p182_p10), %s2284_s16, 1  ;;  %2106 = vmatprep.subr.msk.bf16.mxu1 (!%p182_p10), %vm371_vm0, %v1776_v0  ;;  %2110 = vmatprep.subr.msk.bf16.mxu0 (!%p182_p10), %vm371_vm0, %v2398_v1  ;;  %v373_v2 = vsel (!%p182_p10), %vm371_vm0, %v1776_v0, 0  ;;  %v2407_v3 = vsel (!%p182_p10), %vm371_vm0, %v2398_v1, 0  ;;  %v244_v4 = vld [vmem:[%s2948_s1] sm:$0x3] (!%p182_p10) }
  0x12   : > { %s2390_s30 = scalar_select %p122_p11, %s2276_s14, %s124_s28  }
  0x13   : > { %1951 = vmatpush3.bf16.msra.mxu1 (!%p182_p10), %v373_v2  ;;  %1991 = vmatpush3.bf16.msra.mxu0 (!%p182_p10), %v2407_v3  ;;  %s1904_s11 = smul.u32 (!%p182_p10), 48, %s2280_s15  ;;  %v2419_v5 = vld [vmem:[%s2948_s1 + $0xa] sm:$0x3] (!%p182_p10)  ;;  %vm245_vm1 = vsmask.f32 (!%p182_p10), 3328  ;;  %vm358_vm3 = vcmask (!%p182_p10), 31744  }
  0x14   : > { %2107 = vmatprep.subr.msk.bf16.mxu1 (!%p182_p10), %vm371_vm0, %v244_v4  ;;  %2112 = vmatprep.subr.msk.bf16.mxu0 (!%p182_p10), %vm371_vm0, %v2419_v5  ;;  %vm246_vm2 = vsmask.f32 (!%p182_p10), 7440  ;;  %v2469_v35 = vsel (!%p182_p10), %vm371_vm0, %v244_v4, 0  ;;  %v2498_v63 = vsel (!%p182_p10), %vm371_vm0, %v2419_v5, 0  ;;  %vm544_vm5 = vcmask (!%p182_p10), 1042432   ;;  %s210_s27 = sand.u32 (!%p182_p10), 1, %s2272_s13  }
  0x15   : > { %vm2464_vm4 = vmor (!%p182_p10), %vm245_vm1, %vm246_vm2  ;;  %vm545_vm6 = vcmask (!%p182_p10), 1046532   ;;  %v1896_v31 = vld [vmem:[%s2949_s2] ss:$0 sm:$0xff] (!%p182_p10)  ;;  %s1899_s7 = sshll.u32 (!%p182_p10), %s2280_s15, 3 }
  0x16   : > { %vm2556_vm7 = vmor (!%p182_p10), %vm544_vm5, %vm545_vm6 }
  0x18   : > { %s214_s8 = scalar_select %p213_p12, %s2284_s16, 1 }
  0x1a   : > { %s2116_s24 = smul.u32 216, %s214_s8  ;;  %s1900_s8 = sshll.u32 %s2284_s16, 5 }
  0x1b   : > { %s1641_s10 = sadd.s32 %s1900_s8, %s1899_s7 }
  0x1c   : > { %s217_s29 = scalar_lea.vmem %s2947_s0, %s2116_s24  ;;  %s1901_s15 = sshll.u32 %s1641_s10, 7 }
  0x1d   : > { %s2426_s4 = scalar_lea.vmem %s217_s29, %s1904_s11  ;;  %s2886_s21 = scalar_lea.hbm %s2950_s3, %s1901_s15 }
  0x1e   : > { %v2429_v6 = vld [vmem:[%s2426_s4] sm:$0xf]  ;;  %v2432_v7 = vld [vmem:[%s2426_s4 + $0x4] sm:$0xf]  ;;  %v2435_v8 = vld [vmem:[%s2426_s4 + $0x8] sm:$0x1] }
  0x1f   : > { %v249_v9 = vshrl.u32 %v2429_v6, 16  ;;  %v252_v10 = vshll.u32 %v2429_v6, 16  ;;  %v258_v11 = vshll.u32 %v2432_v7, 16  ;;  %v262_v12 = vshrl.u32 %v2432_v7, 16  ;;  %v2442_v13 = vld [vmem:[%s2426_s4 + $0xc] sm:$0xf] }
  0x20   : > { %v268_v14 = vshll.u32 %v2435_v8, 16  ;;  %v2446_v15 = vld [vmem:[%s2426_s4 + $0x10] sm:$0xf]  ;;  %v2449_v16 = vld [vmem:[%s2426_s4 + $0x14] sm:$0x1]  ;;  %v804_v22 = vshrl.u32 %v2442_v13, 16 }
  0x21   : > { %v251_v17 = vrot.slane %v249_v9, 4  ;;  %v254_v18 = vrot.slane %v252_v10, 5  ;;  %v260_v19 = vrot.slane %v258_v11, 5  ;;  %v264_v20 = vrot.slane %v262_v12, 4  ;;  %v2457_v29 = vld [vmem:[%s2426_s4 + $0xc] sm:$0xf] }
  0x22   : > { %v270_v21 = vrot.slane %v268_v14, 5  ;;  %v807_v23 = vshll.u32 %v2442_v13, 16  ;;  %v813_v24 = vshll.u32 %v2446_v15, 16  ;;  %v817_v27 = vshrl.u32 %v2446_v15, 16  ;;  %v2460_v30 = vld [vmem:[%s2426_s4 + $0x10] sm:$0xf] }
  0x23   : > { %v255_v25 = vor.u32 %v254_v18, %v251_v17  ;;  %v265_v26 = vor.u32 %v264_v20, %v260_v19  ;;  %v823_v28 = vshll.u32 %v2449_v16, 16  ;;  %v806_v32 = vrot.slane %v804_v22, 4  ;;  %v2472_v41 = vld [vmem:[%s2426_s4 + $0x14] sm:$0x1]  ;;  %v2483_v53 = vld [vmem:[%s2426_s4 + $0x18] sm:$0xf] }
  0x24   : > { %v809_v33 = vrot.slane %v807_v23, 5  ;;  %v815_v34 = vrot.slane %v813_v24, 5  ;;  %v819_v38 = vrot.slane %v817_v27, 4  ;;  %v273_v42 = vshrl.u32 %v2457_v29, 16  ;;  %v2487_v58 = vld [vmem:[%s2426_s4 + $0x1c] sm:$0xf] }
  0x25   : > { %v256_v36 = vrot.slane %v255_v25, 4  ;;  %v266_v37 = vrot.slane %v265_v26, 4  ;;  %v825_v39 = vrot.slane %v823_v28, 5  ;;  %v276_v43 = vshll.u32 %v2457_v29, 16  ;;  %v2494_v62 = vld [vmem:[%s2426_s4 + $0x20] sm:$0x1] }
  0x26   : > { %v810_v40 = vor.u32 %v809_v33, %v806_v32  ;;  %v282_v44 = vshll.u32 %v2460_v30, 16  ;;  %v820_v47 = vor.u32 %v819_v38, %v815_v34  ;;  %v286_v48 = vshrl.u32 %v2460_v30, 16  ;;  %v2506_v17 = vld [vmem:[%s2426_s4 + $0x18] sm:$0xf]  ;;  %v2518_v26 = vld [vmem:[%s2426_s4 + $0x20] sm:$0x1] }
  0x27   : > { %v261_v45 = vsel %vm2464_vm4, %v256_v36, %v260_v19  ;;  %v271_v46 = vsel %vm2464_vm4, %v266_v37, %v270_v21  ;;  %v275_v51 = vrot.slane %v273_v42, 4  ;;  %v278_v52 = vrot.slane %v276_v43, 5  ;;  %v2511_v21 = vld [vmem:[%s2426_s4 + $0x1c] sm:$0xf]  ;;  %s2895_s24 = scalar_lea.sflag [#allocation3], %s210_s27  ;;  %s2298_s29 = smov [#allocation2]  }
  0x28   : > { %v1777_v49 = vcombine.low %v261_v45, %v271_v46  ;;  %v811_v50 = vrot.slane %v810_v40, 4  ;;  %v821_v54 = vrot.slane %v820_v47, 4  ;;  %v284_v55 = vrot.slane %v282_v44, 5  ;;  %v2531_v40 = vld [vmem:[%s2948_s1 + $0x4] sm:$0x3] }
  0x29   : > { %v288_v56 = vrot.slane %v286_v48, 4  ;;  %v292_v57 = vshll.u32 %v2472_v41, 16  ;;  %v1010_v60 = vrot.slane %v2449_v16, 5  ;;  %v279_v61 = vor.u32 %v278_v52, %v275_v51  ;;  %v2536_v46 = vld [vmem:[%s2426_s4 + $0x28] sm:$0xf] }
  0x2a   : > { %1952 = vmatprep.mubr.msk.bf16.mxu1 %vm358_vm3, %v1777_v49  ;;  %v816_v59 = vsel %vm2464_vm4, %v811_v50, %v815_v34  ;;  %v826_v0 = vsel %vm2464_vm4, %v821_v54, %v825_v39  ;;  %v828_v9 = vshrl.u32 %v2483_v53, 16  ;;  %v831_v12 = vshll.u32 %v2483_v53, 16  ;;  %v2524_v34 = vld [vmem:[%s2426_s4 + $0x24] sm:$0xf] }
  0x2b   : > { %v289_v2 = vor.u32 %v288_v56, %v284_v55  ;;  %v294_v4 = vrot.slane %v292_v57, 5  ;;  %v1830_v10 = vcombine.low %v816_v59, %v826_v0  ;;  %v280_v11 = vrot.slane %v279_v61, 4 }
  0x2c   : > { %v837_v14 = vshll.u32 %v2487_v58, 16  ;;  %v830_v18 = vrot.slane %v828_v9, 4  ;;  %v841_v19 = vshrl.u32 %v2487_v58, 16  ;;  %v847_v20 = vshll.u32 %v2494_v62, 16 }
  0x2d   : > { %v290_v5 = vrot.slane %v289_v2, 4  ;;  %1992 = vmatprep.mubr.msk.bf16.mxu0 %vm358_vm3, %v1830_v10  ;;  %v285_v22 = vsel %vm2464_vm4, %v280_v11, %v284_v55  ;;  %v833_v23 = vrot.slane %v831_v12, 5  ;;  %v1017_v25 = vrot.slane %v2494_v62, 5  ;;  %v2542_v55 = vld [vmem:[%s2426_s4 + $0x2c] sm:$0x1] }
  0x2e   : > { %v839_v24 = vrot.slane %v837_v14, 5  ;;  %v843_v28 = vrot.slane %v841_v19, 4  ;;  %v849_v32 = vrot.slane %v847_v20, 5  ;;  %v297_v33 = vshrl.u32 %v2506_v17, 16 }
  0x2f   : > { %v295_v27 = vsel %vm2464_vm4, %v290_v5, %v294_v4  ;;  %v834_v37 = vor.u32 %v833_v23, %v830_v18  ;;  %v300_v38 = vshll.u32 %v2506_v17, 16  ;;  %v306_v39 = vshll.u32 %v2511_v21, 16  ;;  %v1865_v23 = vld [vmem:[%s2948_s1 + $0xc] sm:$0x3] }
  0x30   : > { %v1778_v36 = vcombine.low %v285_v22, %v295_v27  ;;  %v844_v42 = vor.u32 %v843_v28, %v839_v24  ;;  %v299_v43 = vrot.slane %v297_v33, 4  ;;  %v310_v44 = vshrl.u32 %v2511_v21, 16  ;;  %v2570_v33 = vld [vmem:[%s2426_s4 + $0x24] sm:$0xf] }
  0x31   : > { %v316_v45 = vshll.u32 %v2518_v26, 16  ;;  %v835_v47 = vrot.slane %v834_v37, 4  ;;  %v302_v48 = vrot.slane %v300_v38, 5  ;;  %v308_v49 = vrot.slane %v306_v39, 5 }
  0x32   : > { %1953 = vmatmul.mubr.msk.bf16.vlgmr.msra.gmra.mrb[0].mxu1 %vm358_vm3, %v1778_v36  ;;  %v321_v50 = vshrl.u32 %v2524_v34, 16  ;;  %v845_v51 = vrot.slane %v844_v42, 4  ;;  %v312_v52 = vrot.slane %v310_v44, 4  ;;  %v324_v56 = vshll.u32 %v2524_v34, 16  ;;  %v2577_v42 = vld [vmem:[%s2426_s4 + $0x28] sm:$0xf] }
  0x33   : > { %1961 = vmatpush3.bf16.msra.mxu1 %v2469_v35  ;;  %v318_v54 = vrot.slane %v316_v45, 5  ;;  %v840_v57 = vsel %vm2464_vm4, %v835_v47, %v839_v24  ;;  %v303_v59 = vor.u32 %v302_v48, %v299_v43  ;;  %v330_v0 = vshll.u32 %v2536_v46, 16  ;;  %v2580_v43 = vld [vmem:[%s2426_s4 + $0x2c] sm:$0x1] }
  0x34   : > { %v323_v61 = vrot.slane %v321_v50, 4  ;;  %2108 = vmatprep.subr.msk.bf16.mxu1 %vm371_vm0, %v2531_v40  ;;  %v850_v35 = vsel %vm2464_vm4, %v845_v51, %v849_v32  ;;  %v313_v2 = vor.u32 %v312_v52, %v308_v49  ;;  %v326_v4 = vrot.slane %v324_v56, 5 }
  0x35   : > { %v334_v9 = vshrl.u32 %v2536_v46, 16  ;;  %v1831_v10 = vcombine.low %v840_v57, %v850_v35  ;;  %v304_v11 = vrot.slane %v303_v59, 4  ;;  %v332_v12 = vrot.slane %v330_v0, 5  ;;  %v2606_v0 = vld [vmem:[%s2426_s4 + $0x30] sm:$0xf] }
  0x36   : > { %v340_v14 = vshll.u32 %v2542_v55, 16  ;;  %v314_v5 = vrot.slane %v313_v2, 4  ;;  %v327_v18 = vor.u32 %v326_v4, %v323_v61  ;;  %v1838_v22 = vrot.slane %v2442_v13, 9 }
  0x37   : > { %v336_v19 = vrot.slane %v334_v9, 4  ;;  %1993 = vmatmul.mubr.msk.bf16.vlgmr.msra.gmra.mrb[0].mxu0 %vm358_vm3, %v1831_v10  ;;  %v309_v24 = vsel %vm2464_vm4, %v304_v11, %v308_v49  ;;  %v1007_v28 = vrot.slane %v2446_v15, 5  ;;  %v1839_v32 = vrot.slane %v2483_v53, 9  ;;  %v2615_v9 = vld [vmem:[%s2426_s4 + $0x38] sm:$0x1] }
  0x38   : > { %v342_v27 = vrot.slane %v340_v14, 5  ;;  %2001 = vmatpush3.bf16.msra.mxu0 %v2498_v63  ;;  %v319_v36 = vsel %vm2464_vm4, %v314_v5, %v318_v54  ;;  %v328_v37 = vrot.slane %v327_v18, 4  ;;  %v1014_v39 = vrot.slane %v2487_v58, 5  ;;  %v1820_v5 = vld [vmem:[%s2948_s1 + $0x6] sm:$0x3] }
  0x39   : > { %v337_v38 = vor.u32 %v336_v19, %v332_v12  ;;  %v1779_v44 = vcombine.low %v309_v24, %v319_v36  ;;  %v1008_v45 = vsel %vm2556_vm7, %v1838_v22, %v1007_v28  ;;  %v1009_v47 = vrot.slane %v1007_v28, 4  ;;  %2113 = vmatprep.subr.msk.bf16.mxu0 %vm371_vm0, %v1865_v23 }
  0x3a   : > { %v333_v63 = vsel %vm2464_vm4, %v328_v37, %v332_v12  ;;  %v1016_v49 = vrot.slane %v1014_v39, 4  ;;  %v1785_v50 = vcombine.low %v2429_v6, %v2432_v7  ;;  %v1840_v52 = vrot.slane %v2570_v33, 9  ;;  %v1874_v12 = vld [vmem:[%s2948_s1 + $0xe] sm:$0x3]  ;;  %v2644_v37 = vld [vmem:[%s2426_s4 + $0x18] sm:$0xf] }
  0x3b   : > { %v338_v48 = vrot.slane %v337_v38, 4  ;;  %1956 = vmatprep.mubr.msk.bf16.mxu1 %vm358_vm3, %v1779_v44  ;;  %v1011_v51 = vsel %vm2556_vm7, %v1009_v47, %v1010_v60  ;;  %v1021_v54 = vrot.slane %v2577_v42, 5  ;;  %v1024_v56 = vrot.slane %v2580_v43, 5  ;;  %v2609_v60 = vld [vmem:[%s2426_s4 + $0x34] sm:$0xf] }
  0x3c   : > { %v1843_v59 = vcombine.low %v1008_v45, %v1011_v51  ;;  %v1015_v61 = vsel %vm2556_vm7, %v1839_v32, %v1014_v39  ;;  %v1018_v16 = vsel %vm2556_vm7, %v1016_v49, %v1017_v25  ;;  %v1841_v25 = vrot.slane %v2606_v0, 9  ;;  %v2647_v38 = vld [vmem:[%s2426_s4 + $0x1c] sm:$0xf]  ;;  %v2661_v45 = vld [vmem:[%s2426_s4 + $0x24] sm:$0xf] }
  0x3d   : > { %v343_v57 = vsel %vm2464_vm4, %v338_v48, %v342_v27  ;;  %v1022_v2 = vsel %vm2556_vm7, %v1840_v52, %v1021_v54  ;;  %v1023_v4 = vrot.slane %v1021_v54, 4  ;;  %v1844_v10 = vcombine.low %v1015_v61, %v1018_v16  ;;  %v2664_v47 = vld [vmem:[%s2426_s4 + $0x28] sm:$0xf] }
  0x3e   : > { %v1780_v35 = vcombine.low %v333_v63, %v343_v57  ;;  %2002 = vmatprep.mubr.msk.bf16.mxu0 %vm358_vm3, %v1843_v59  ;;  %v1028_v11 = vrot.slane %v2609_v60, 5  ;;  %v556_v18 = vrot.slane %v2460_v30, 5  ;;  %v1186_v19 = vsel %vm371_vm0, %v1865_v23, 0  ;;  %v2679_v57 = vld [vmem:[%s2426_s4 + $0x34] sm:$0xf] }
  0x3f   : > { %v1025_v62 = vsel %vm2556_vm7, %v1023_v4, %v1024_v56  ;;  %v1031_v24 = vrot.slane %v2615_v9, 5  ;;  %v602_v27 = vsel %vm371_vm0, %v2531_v40, 0  ;;  %v2635_v28 = vsel %vm371_vm0, %v1874_v12, 0 }
  0x40   : > { %1957 = vmatmul.mubr.msk.bf16.gmra.mrb[4].mxu1 %vm358_vm3, %v1780_v35  ;;  %v1845_v14 = vcombine.low %v1022_v2, %v1025_v62  ;;  %v1030_v22 = vrot.slane %v1028_v11, 4  ;;  %v559_v32 = vrot.slane %v2472_v41, 5  ;;  %v1786_v36 = vcombine.low %v2457_v29, %v2460_v30 }
  0x41   : > { %1962 = vmatprep.mubr.msk.bf16.mxu1 %vm358_vm3, %v1785_v50  ;;  %v1029_v23 = vsel %vm2556_vm7, %v1841_v25, %v1028_v11  ;;  %v2650_v40 = vsel %vm371_vm0, %v1820_v5, 0  ;;  %v552_v39 = vrot.slane %v2435_v8, 5  ;;  %v1787_v41 = vcombine.low %v2506_v17, %v2511_v21  ;;  %v2671_v50 = vld [vmem:[%s2426_s4 + $0x30] sm:$0xf] }
  0x42   : > { %v1032_v30 = vsel %vm2556_vm7, %v1030_v22, %v1031_v24  ;;  %v1788_v44 = vcombine.low %v2524_v34, %v2536_v46  ;;  %v1793_v8 = vrot.slane %v2429_v6, 9  ;;  %v549_v63 = vrot.slane %v2432_v7, 5 }
  0x43   : > { %2003 = vmatmul.mubr.msk.bf16.vlgmr.msra.gmra.mrb[0].mxu0 %vm358_vm3, %v1844_v10  ;;  %v1794_v48 = vrot.slane %v2457_v29, 9  ;;  %v558_v49 = vrot.slane %v556_v18, 4  ;;  %v1866_v51 = vcombine.low %v2644_v37, %v2647_v38  ;;  %v1262_v52 = vshrl.u32 %v2644_v37, 16 }
  0x44   : > { %2011 = vmatpush3.bf16.msra.mxu0 %v1186_v19  ;;  %2006 = vmatprep.mubr.msk.bf16.mxu0 %vm358_vm3, %v1845_v14  ;;  %v1265_v54 = vshll.u32 %v2644_v37, 16  ;;  %v1275_v56 = vshrl.u32 %v2647_v38, 16  ;;  %v1846_v6 = vcombine.low %v1029_v23, %v1032_v30  ;;  %v551_v7 = vrot.slane %v549_v63, 4  ;;  %v2710_v19 = vld [vmem:[%s2426_s4 + $0x20] sm:$0x1] }
  0x45   : > { %2114 = vmatprep.subr.msk.bf16.mxu0 %vm371_vm0, %v1874_v12  ;;  %v2684_v29 = vsel %vm2556_vm7, %v1794_v48, %v556_v18  ;;  %v2688_v59 = vsel %vm2556_vm7, %v558_v49, %v559_v32  ;;  %v1867_v61 = vcombine.low %v2661_v45, %v2664_v47  ;;  %v1286_v16 = vshrl.u32 %v2661_v45, 16 }
  0x46   : > { %v1289_v35 = vshll.u32 %v2661_v45, 16  ;;  %v1299_v2 = vshrl.u32 %v2664_v47, 16  ;;  %v550_v4 = vsel %vm2556_vm7, %v1793_v8, %v549_v63  ;;  %v553_v10 = vsel %vm2556_vm7, %v551_v7, %v552_v39 }
  0x47   : > { %v1868_v62 = vcombine.low %v2671_v50, %v2679_v57  ;;  %v563_v25 = vrot.slane %v2511_v21, 5  ;;  %v1799_v11 = vcombine.low %v2684_v29, %v2688_v59  ;;  %v1310_v12 = vshrl.u32 %v2671_v50, 16 }
  0x48   : > { %1963 = vmatmul.mubr.msk.bf16.vlgmr.msra.gmra.mrb[0].mxu1 %vm358_vm3, %v1786_v36  ;;  %v1313_v14 = vshll.u32 %v2671_v50, 16  ;;  %v1323_v18 = vshrl.u32 %v2679_v57, 16  ;;  %v1795_v22 = vrot.slane %v2506_v17, 9  ;;  %v566_v21 = vrot.slane %v2518_v26, 5  ;;  %v2720_v36 = vld [vmem:[%s2426_s4 + $0x40] sm:$0xf] }
  0x49   : > { %1971 = vmatpush3.bf16.msra.mxu1 %v602_v27  ;;  %1966 = vmatprep.mubr.msk.bf16.mxu1 %vm358_vm3, %v1787_v41  ;;  %v565_v24 = vrot.slane %v563_v25, 4  ;;  %v1264_v27 = vrot.slane %v1262_v52, 4  ;;  %v1798_v32 = vcombine.low %v550_v4, %v553_v10  ;;  %v1267_v39 = vrot.slane %v1265_v54, 5  ;;  %v2727_v17 = vld [vmem:[%s2426_s4 + $0x2c] sm:$0x1] }
  0x4a   : > { %2109 = vmatprep.subr.msk.bf16.mxu1 %vm371_vm0, %v1820_v5  ;;  %v2714_v5 = vld [vmem:[%s2426_s4 + $0x3c] sm:$0xf]  ;;  %v1271_v30 = vshll.u32 %v2647_v38, 16  ;;  %v1277_v8 = vrot.slane %v1275_v56, 4  ;;  %v1281_v63 = vshll.u32 %v2710_v19, 16  ;;  %v1288_v48 = vrot.slane %v1286_v16, 4 }
  0x4b   : > { %2007 = vmatmul.mubr.msk.bf16.gmra.mrb[4].mxu0 %vm358_vm3, %v1846_v6  ;;  %v1334_v23 = vshrl.u32 %v2714_v5, 16  ;;  %v1337_v41 = vshll.u32 %v2714_v5, 16  ;;  %v1347_v26 = vshrl.u32 %v2720_v36, 16  ;;  %v570_v49 = vrot.slane %v2536_v46, 5 }
  0x4c   : > { %2012 = vmatprep.mubr.msk.bf16.mxu0 %vm358_vm3, %v1866_v51  ;;  %v1268_v51 = vor.u32 %v1267_v39, %v1264_v27  ;;  %v1273_v52 = vrot.slane %v1271_v30, 5  ;;  %v564_v54 = vsel %vm2556_vm7, %v1795_v22, %v563_v25  ;;  %v567_v6 = vsel %vm2556_vm7, %v565_v24, %v566_v21  ;;  %v1887_v25 = vld [vmem:[%s2948_s1 + $0x10] sm:$0x3]  ;;  %v2745_v30 = vld [vmem:[%s2426_s4 + $0x38] sm:$0x1] }
  0x4d   : > { %v1291_v56 = vrot.slane %v1289_v35, 5  ;;  %v1295_v7 = vshll.u32 %v2664_v47, 16  ;;  %v1301_v10 = vrot.slane %v1299_v2, 4  ;;  %v1305_v46 = vshll.u32 %v2727_v17, 16 }
  0x4e   : > { %v1269_v16 = vrot.slane %v1268_v51, 4  ;;  %v1278_v4 = vor.u32 %v1277_v8, %v1273_v52  ;;  %v1796_v27 = vrot.slane %v2524_v34, 9  ;;  %v572_v21 = vrot.slane %v570_v49, 4 }
  0x4f   : > { %v1292_v22 = vor.u32 %v1291_v56, %v1288_v48  ;;  %v1297_v24 = vrot.slane %v1295_v7, 5  ;;  %v573_v35 = vrot.slane %v2542_v55, 5  ;;  %v1800_v2 = vcombine.low %v564_v54, %v567_v6 }
  0x50   : > { %1967 = vmatmul.mubr.msk.bf16.gmra.mrb[4].mxu1 %vm358_vm3, %v1788_v44  ;;  %v1283_v44 = vrot.slane %v1281_v63, 5  ;;  %v1279_v39 = vrot.slane %v1278_v4, 4  ;;  %v1315_v34 = vrot.slane %v1313_v14, 5  ;;  %v1319_v63 = vshll.u32 %v2679_v57, 16 }
  0x51   : > { %1972 = vmatprep.mubr.msk.bf16.mxu1 %vm358_vm3, %v1798_v32  ;;  %v1312_v32 = vrot.slane %v1310_v12, 4  ;;  %v1302_v8 = vor.u32 %v1301_v10, %v1297_v24  ;;  %v1274_v48 = vsel %vm2464_vm4, %v1269_v16, %v1273_v52  ;;  %v1293_v55 = vrot.slane %v1292_v22, 4 }
  0x52   : > { %v1307_v51 = vrot.slane %v1305_v46, 5  ;;  %v1325_v56 = vrot.slane %v1323_v18, 4  ;;  %v1284_v12 = vsel %vm2464_vm4, %v1279_v39, %v1283_v44  ;;  %v1329_v14 = vshll.u32 %v2745_v30, 16 }
  0x53   : > { %2013 = vmatmul.mubr.msk.bf16.vlgmr.msra.gmra.mrb[0].mxu0 %vm358_vm3, %v1867_v61  ;;  %v1316_v61 = vor.u32 %v1315_v34, %v1312_v32  ;;  %v1336_v54 = vrot.slane %v1334_v23, 4  ;;  %v1303_v6 = vrot.slane %v1302_v8, 4  ;;  %v1321_v7 = vrot.slane %v1319_v63, 5 }
  0x54   : > { %2021 = vmatpush3.bf16.msra.mxu0 %v2635_v28  ;;  %2016 = vmatprep.mubr.msk.bf16.mxu0 %vm358_vm3, %v1868_v62  ;;  %v2758_v28 = vld [vmem:[%s2426_s4 + $0x44] sm:$0x1]  ;;  %v1339_v62 = vrot.slane %v1337_v41, 5  ;;  %v1343_v4 = vshll.u32 %v2720_v36, 16  ;;  %v1869_v18 = vcombine.low %v2714_v5, %v2720_v36  ;;  %v571_v52 = vsel %vm2556_vm7, %v1796_v27, %v570_v49  ;;  %s1771_s4 = sshll.u32 %s210_s27, 6 }
  0x55   : > { %2115 = vmatprep.subr.msk.bf16.mxu0 %vm371_vm0, %v1887_v25  ;;  %v1349_v16 = vrot.slane %v1347_v26, 4  ;;  %v574_v23 = vsel %vm2556_vm7, %v572_v21, %v573_v35  ;;  %v1875_v41 = vcombine.low %v1274_v48, %v1284_v12  ;;  %v1326_v10 = vor.u32 %v1325_v56, %v1321_v7  ;;  %s2875_s9 = scalar_lea.vmem [#allocation2], %s1771_s4  ;;  %s2206_s4 = sshll.u32 %s2298_s29, 4  ;;  %s2207_s4 = int_to_ptr.vmem [resolvable:$false] %s2206_s4 }
  0x56   : > { %v2773_v46 = vrot.slane %v1343_v4, 5  ;;  %v1317_v29 = vrot.slane %v1316_v61, 4  ;;  %v1331_v59 = vrot.slane %v1329_v14, 5  ;;  %v1298_v26 = vsel %vm2464_vm4, %v1293_v55, %v1297_v24  ;;  %s1644_s16 = sshll.u32 %s2875_s9, 4  ;;  %s2208_s5 = scalar_lea.vmem %s2207_s4, 2048  ;;  %s2888_s16 = int_to_ptr.vmem [resolvable:$true] %s1644_s16 }
  0x57   : > { %v1327_v49 = vrot.slane %v1326_v10, 4  ;;  %v1340_v27 = vor.u32 %v1339_v62, %v1336_v54  ;;  %v1801_v44 = vcombine.low %v571_v52, %v574_v23  ;;  %v1821_v21 = vcombine.low %v2442_v13, %v2446_v15  ;;  %s2202_s28 = scalar_lea.vmem %s2888_s16, 1024  ;;  %p2209_p2 = scmp.lt.s32.totalorder %s2888_s16, %s2207_s4 }
  0x58   : > { %1973 = vmatmul.mubr.msk.bf16.vlgmr.msra.gmra.mrb[0].mxu1 %vm358_vm3, %v1799_v11  ;;  %v1353_v11 = vshll.u32 %v2758_v28, 16  ;;  %v1350_v22 = vor.u32 %v1349_v16, %v2773_v46  ;;  %v1465_v35 = vrot.slane %v2647_v38, 5  ;;  %v1322_v39 = vsel %vm2464_vm4, %v1317_v29, %v1321_v7  ;;  %p2203_p13 = scmp.ne.s32.totalorder %s2888_s16, %s2202_s28  ;;  %p2210_p4 = scmp.lt.s32.totalorder %s2208_s5, %s2202_s28 }
  0x59   : > { %1981 = vmatpush3.bf16.msra.mxu1 %v2650_v40  ;;  %1976 = vmatprep.mubr.msk.bf16.mxu1 %vm358_vm3, %v1800_v2  ;;  %v1308_v40 = vsel %vm2464_vm4, %v1303_v6, %v1307_v51  ;;  %v1332_v32 = vsel %vm2464_vm4, %v1327_v49, %v1331_v59  ;;  %v1341_v8 = vrot.slane %v1340_v27, 4  ;;  %v1883_v34 = vrot.slane %v2644_v37, 9 }
  0x5a   : > { %2111 = vmatprep.subr.msk.bf16.mxu1 %vm371_vm0, %v2398_v1  ;;  %v1518_v1 = vsel %vm371_vm0, %v1887_v25, 0  ;;  %v1876_v24 = vcombine.low %v1298_v26, %v1308_v40  ;;  %v1355_v2 = vrot.slane %v1353_v11, 5  ;;  %v852_v63 = vshrl.u32 %v2570_v33, 16  ;;  %p2204_p0 = pnand %p2203_p13, %p2372_p3  ;;  %p2211_p5 = por %p2210_p4, %p2209_p2 }
  0x5b   : > { %2017 = vmatmul.mubr.msk.bf16.gmra.mrb[4].mxu0 %vm358_vm3, %v1869_v18  ;;  %v855_v25 = vshll.u32 %v2570_v33, 16  ;;  %v1351_v13 = vrot.slane %v1350_v22, 4  ;;  %v1468_v15 = vrot.slane %v2710_v19, 5  ;;  %v861_v38 = vshll.u32 %v2577_v42, 16 }
  0x5c   : > { %2022 = vmatprep.mubr.msk.bf16.mxu0 %vm358_vm3, %v1875_v41  ;;  %v865_v48 = vshrl.u32 %v2577_v42, 16  ;;  %v1877_v55 = vcombine.low %v1322_v39, %v1332_v32  ;;  %v1467_v51 = vrot.slane %v1465_v35, 4  ;;  %v854_v56 = vrot.slane %v852_v63, 4  ;;  %p2205_p1 = pneg %p2204_p0 }
  0x5d   : > { %v857_v12 = vrot.slane %v855_v25, 5  ;;  %v876_v37 = vshrl.u32 %v2606_v0, 16  ;;  %v863_v61 = vrot.slane %v861_v38, 5  ;;  %v871_v54 = vshll.u32 %v2580_v43, 16 }
  0x5e   : > { %v867_v14 = vrot.slane %v865_v48, 4  ;;  %v879_v6 = vshll.u32 %v2606_v0, 16  ;;  %v885_v19 = vshll.u32 %v2609_v60, 16  ;;  %v889_v7 = vshrl.u32 %v2609_v60, 16  ;;  %p2212_p6 = pnand %p2211_p5, %p2205_p1 }
  0x5f   : > { %v858_v62 = vor.u32 %v857_v12, %v854_v56  ;;  %v1822_v4 = vcombine.low %v2483_v53, %v2487_v58  ;;  %v1346_v18 = vsel %vm2464_vm4, %v1341_v8, %v2773_v46  ;;  %v1823_v52 = vcombine.low %v2570_v33, %v2577_v42 }
  0x60   : > { %1977 = vmatmul.mubr.msk.bf16.gmra.mrb[4].mxu1 %vm358_vm3, %v1801_v44  ;;  %v868_v43 = vor.u32 %v867_v14, %v863_v61  ;;  %v1356_v16 = vsel %vm2464_vm4, %v1351_v13, %v1355_v2  ;;  %v1466_v23 = vsel %vm2556_vm7, %v1883_v34, %v1465_v35  ;;  %v1469_v53 = vsel %vm2556_vm7, %v1467_v51, %v1468_v15  ;;  %v1897_v14 = vld [vmem:[%s2949_s2 + $0x1] ss:$0 sm:$0xff] }
  0x61   : > { %1982 = vmatprep.mubr.msk.bf16.mxu1 %vm358_vm3, %v1821_v21  ;;  %v1472_v58 = vrot.slane %v2664_v47, 5  ;;  %v859_v41 = vrot.slane %v858_v62, 4  ;;  %v873_v46 = vrot.slane %v871_v54, 5  ;;  %v1479_v33 = vrot.slane %v2679_v57, 5 }
  0x62   : > { %v869_v10 = vrot.slane %v868_v43, 4  ;;  %v878_v42 = vrot.slane %v876_v37, 4  ;;  %v881_v29 = vrot.slane %v879_v6, 5  ;;  %v887_v59 = vrot.slane %v885_v19, 5 }
  0x63   : > { %2023 = vmatmul.mubr.msk.bf16.vlgmr.msra.gmra.mrb[0].mxu0 %vm358_vm3, %v1876_v24  ;;  %v891_v11 = vrot.slane %v889_v7, 4  ;;  %v1878_v26 = vcombine.low %v1346_v18, %v1356_v16  ;;  %v1884_v40 = vrot.slane %v2661_v45, 9  ;;  %v1888_v49 = vcombine.low %v1466_v23, %v1469_v53 }
  0x64   : > { %2031 = vmatpush3.bf16.msra.mxu0 %v1518_v1  ;;  %2026 = vmatprep.mubr.msk.bf16.mxu0 %vm358_vm3, %v1877_v55  ;;  %v1474_v47 = vrot.slane %v1472_v58, 4  ;;  %v1475_v27 = vrot.slane %v2727_v17, 5  ;;  %v1885_v44 = vrot.slane %v2671_v50, 9  ;;  %v864_v57 = vsel %vm2464_vm4, %v859_v41, %v863_v61 }
  0x65   : > { %v874_v22 = vsel %vm2464_vm4, %v869_v10, %v873_v46  ;;  %v1481_v1 = vrot.slane %v1479_v33, 4  ;;  %v1482_v21 = vrot.slane %v2745_v30, 5  ;;  %v895_v45 = vshll.u32 %v2615_v9, 16 }
  0x66   : > { %v1473_v17 = vsel %vm2556_vm7, %v1884_v40, %v1472_v58  ;;  %v882_v50 = vor.u32 %v881_v29, %v878_v42  ;;  %v1476_v35 = vsel %vm2556_vm7, %v1474_v47, %v1475_v27  ;;  %v1832_v24 = vcombine.low %v864_v57, %v874_v22 }
  0x67   : > { %v892_v39 = vor.u32 %v891_v11, %v887_v59  ;;  %v1486_v30 = vrot.slane %v2720_v36, 5  ;;  %v1480_v9 = vsel %vm2556_vm7, %v1885_v44, %v1479_v33  ;;  %v1483_v32 = vsel %vm2556_vm7, %v1481_v1, %v1482_v21 }
  0x68   : > { %1983 = vmatmul.mubr.msk.bf16.vlgmr.msra.gmra.mrb[0].mxu1 %vm358_vm3, %v1822_v4  ;;  %v883_v2 = vrot.slane %v882_v50, 4  ;;  %v1886_v8 = vrot.slane %v2714_v5, 9  ;;  %v1890_v34 = vcombine.low %v1480_v9, %v1483_v32  ;;  %v1489_v36 = vrot.slane %v2758_v28, 5 }
  0x69   : > { %2041 = vmatpush3.bf16.msra.mxu1 %v2407_v3  ;;  %1986 = vmatprep.mubr.msk.bf16.mxu1 %vm358_vm3, %v1823_v52  ;;  %v1824_v3 = vcombine.low %v2606_v0, %v2609_v60  ;;  %v897_v0 = vrot.slane %v895_v45, 5  ;;  %v1889_v60 = vcombine.low %v1473_v17, %v1476_v35  ;;  %v893_v63 = vrot.slane %v892_v39, 4 }
  0x6a   : > { %v1488_v25 = vrot.slane %v1486_v30, 4  ;;  %v888_v13 = vsel %vm2464_vm4, %v883_v2, %v887_v59  ;;  %v1487_v5 = vsel %vm2556_vm7, %v1886_v8, %v1486_v30 }
  0x6b   : > { %2027 = vmatmul.mubr.msk.bf16.gmra.mrb[4].mxu0 %vm358_vm3, %v1878_v26  ;;  %v898_v15 = vsel %vm2464_vm4, %v893_v63, %v897_v0 }
  0x6c   : > { %2032 = vmatprep.mubr.msk.bf16.mxu0 %vm358_vm3, %v1888_v49  ;;  %v1490_v38 = vsel %vm2556_vm7, %v1488_v25, %v1489_v36  ;;  %v1833_v48 = vcombine.low %v888_v13, %v898_v15 }
  0x6d   : > { %v1891_v55 = vcombine.low %v1487_v5, %v1490_v38 }
  0x70   : > { %1987 = vmatmul.mubr.msk.bf16.gmra.mrb[4].mxu1 %vm358_vm3, %v1824_v3 }
  0x71   : > { %1996 = vmatprep.mubr.msk.bf16.mxu1 %vm358_vm3, %v1832_v24 }
  0x73   : > { %2033 = vmatmul.mubr.msk.bf16.vlgmr.msra.gmra.mrb[0].mxu0 %vm358_vm3, %v1889_v60 }
  0x74   : > { %2036 = vmatprep.mubr.msk.bf16.mxu0 %vm358_vm3, %v1890_v34 }
  0x7b   : > { %2037 = vmatmul.mubr.msk.bf16.gmra.mrb[4].mxu0 %vm358_vm3, %v1891_v55 }
  0x7c   : > { %1997 = vmatmul.mubr.msk.bf16.vlgmr.msra.gmra.mrb[4].mxu1 %vm358_vm3, %v1833_v48 }
 0x13b   : > { %v1984_v28 = vpop.f32.mrb[0].mxu1 }
 0x13c   : > { %v764_v51 = vpop.f32.mrb[1].mxu1 }
 0x13d   : > { %v1985_v56 = vpop.f32.mrb[2].mxu1 }
 0x13e   : > { %v767_v12 = vpop.f32.mrb[3].mxu1 }
 0x146   : > { %v2034_v37 = vpop.f32.mrb[0].mxu0 }
 0x147   : > { %v2042_v20 = vadd.f32 %v2034_v37, %v1984_v28  ;;  %v1554_v61 = vpop.f32.mrb[1].mxu0 }
 0x148   : > { %v2043_v54 = vadd.f32 %v1554_v61, %v764_v51  ;;  %v2035_v6 = vpop.f32.mrb[2].mxu0 }
 0x149   : > { %v1600_v19 = vmul.f32 %v2042_v20, %v1896_v31  ;;  %v2044_v7 = vadd.f32 %v2035_v6, %v1985_v56  ;;  %v1557_v62 = vpop.f32.mrb[3].mxu0 }
 0x14a   : > { %v1598_v4 = vmul.f32 %v2043_v54, %v1896_v31  ;;  %v2045_v18 = vadd.f32 %v1557_v62, %v767_v12 }
 0x14b   : > { %v1613_v52 = vadd.f32 %v1897_v14, %v1600_v19  ;;  %v1601_v43 = vmul.f32 %v2044_v7, %v1896_v31 }
 0x14c   : > { %v1611_v16 = vadd.f32 %v1897_v14, %v1598_v4  ;;  %v1599_v23 = vmul.f32 %v2045_v18, %v1896_v31 }
 0x14d   : > { %1621 = vst [vmem:[%s2875_s9 + $0x10] sm:$0xff] %v1613_v52  ;;  %v1614_v53 = vadd.f32 %v1897_v14, %v1601_v43 }
 0x14e   : > { %1619 = vst [vmem:[%s2875_s9] sm:$0xff] %v1611_v16  ;;  %v1612_v58 = vadd.f32 %v1897_v14, %v1599_v23  ;;  %v2038_v10 = vpop.f32.mrb[4].mxu0 }
 0x14f   : > { %v1998_v41 = vpop.f32.mrb[4].mxu1  ;;  %1622 = vst [vmem:[%s2875_s9 + $0x18] sm:$0xff] %v1614_v53  ;;  %v1570_v42 = vpop.f32.mrb[5].mxu0 }
 0x150   : > { %v2046_v46 = vadd.f32 %v2038_v10, %v1998_v41  ;;  %v978_v33 = vpop.f32.mrb[5].mxu1  ;;  %1620 = vst [vmem:[%s2875_s9 + $0x8] sm:$0xff] %v1612_v58  ;;  %v2039_v11 = vpop.f32.mrb[6].mxu0 }
 0x151   : > { %v2047_v29 = vadd.f32 %v1570_v42, %v978_v33  ;;  %v1999_v59 = vpop.f32.mrb[6].mxu1  ;;  %v1573_v47 = vpop.f32.mrb[7].mxu0 }
 0x152   : > { %v1604_v26 = vmul.f32 %v2046_v46, %v1896_v31  ;;  %v2048_v40 = vadd.f32 %v2039_v11, %v1999_v59  ;;  %v981_v49 = vpop.f32.mrb[7].mxu1 }
 0x153   : > { %v1602_v27 = vmul.f32 %v2047_v29, %v1896_v31  ;;  %v2049_v44 = vadd.f32 %v1573_v47, %v981_v49 }
 0x154   : > { %v1617_v57 = vadd.f32 %v1897_v14, %v1604_v26  ;;  %v1605_v22 = vmul.f32 %v2048_v40, %v1896_v31 }
 0x155   : > { %v1615_v1 = vadd.f32 %v1897_v14, %v1602_v27  ;;  %v1603_v21 = vmul.f32 %v2049_v44, %v1896_v31 }
 0x156   : > { %1625 = vst [vmem:[%s2875_s9 + $0x30] sm:$0xff] %v1617_v57  ;;  %v1618_v45 = vadd.f32 %v1897_v14, %v1605_v22 }
 0x157   : > { %1623 = vst [vmem:[%s2875_s9 + $0x20] sm:$0xff] %v1615_v1  ;;  %v1616_v3 = vadd.f32 %v1897_v14, %v1603_v21 }
 0x158   : > { %1626 = vst [vmem:[%s2875_s9 + $0x38] sm:$0xff] %v1618_v45 }
 0x159   : > { %1624 = vst [vmem:[%s2875_s9 + $0x28] sm:$0xff] %v1616_v3 }
 0x15a   : > { %2215 = shalt.err (!%p2212_p6)
}
 0x15b   : > { %s2216_s27 = scalar_lea.hbm %s2886_s21, 1024  ;;  %s2220_s8 = scalar_lea.hbm %s2950_s3, 8192 }
 0x15c   : > { %p2217_p7 = scmp.ne.s32.totalorder %s2886_s21, %s2216_s27  ;;  %p2221_p11 = scmp.lt.u32.totalorder %s2886_s21, %s2950_s3 }
 0x15d   : > { %p2222_p12 = scmp.lt.u32.totalorder %s2220_s8, %s2216_s27  ;;  %p2224_p0 = scmp.lt.u32.totalorder %s2216_s27, %s2886_s21 }
 0x15e   : > { %p2218_p9 = pnand %p2217_p7, %p2372_p3 }
 0x15f   : > { %p2223_p13 = por %p2222_p12, %p2221_p11 }
 0x160   : > { %p2219_p10 = pneg %p2218_p9 }
 0x161   : > { %p2225_p1 = por %p2224_p0, %p2223_p13 }
 0x163   : > { %p2226_p2 = pnand %p2225_p1, %p2219_p10 }
 0x165   : > { %2229 = shalt.err (!%p2226_p2)
}
 0x166   : > { %s2299_s15 = smov 128   ;;  %s2300_s11 = smov 8  }
 0x167   : > { %2117 = dma.vmem_to_hbm [thread:$0]  (%p2372_p3), %s2888_s16, 1024, %s2886_s21, %s2895_s24, %s2299_s15, %s2299_s15, %s2300_s11  }
 0x168 PF: > { %p2123_p4 = scmp.ge.s32.totalorder %s2296_s19, 2  ;;  %s1659_s20 = sand.u32 1, %s2268_s12  }
 0x169   : > { %s1660_s28 = scalar_lea.sflag [#allocation3], %s1659_s20 }
 0x16a   : > { %p2120_p5 = pnand %p2123_p4, %p2381_p8 }
 0x16c   : > { %2263 = dma.done.wait (!%p2120_p5), %s1660_s28, 1024  }
 0x16d   : > { %2265 = vsyncadd (!%p2120_p5), %s1660_s28, 4294966272  ;;  %s16_s19 = sadd.s32 1, %s2296_s19   ;;  %s2957_s12 = smov %s2272_s13 }
 0x16e   : > { %p13_p6 = scmp.ge.s32.totalorder %s16_s19, 10   ;;  %s2958_s13 = smov %s2276_s14 }
 0x16f   : > { %s2959_s14 = smov %s2390_s30  ;;  %s2960_s15 = smov %s2288_s17 }
 0x170   : > { %s2961_s16 = smov %s2292_s18  ;;  %s2962_s17 = smov %s2965_s22 }
 0x171   : > { %s2963_s18 = smov %s2969_s23  ;;  %15 = sbr.rel (!%p13_p6) target bundleno = 5 (0x5), region = 84 }
 0x178   :  { %1665 = vsyncpa [#allocation3], 1 }
 0x179   :  { %1667 = vsyncpa [#allocation3 + $0x1], 1 }

</bundles_post_ra>
